<compile_context>
chip_gen: v5e
topology: v5e:2x2
jax: 0.10.0
libtpu: 0.0.40
codegen_flags: <defaults>
</compile_context>

<pallas_src>
import math

import jax
import jax.numpy as jnp
from jax.experimental import pallas as pl
from jax.experimental.pallas import tpu as pltpu  # noqa: F401  (kept for prod TODOs)

# ------------------------- small, module-consistent config -------------------------
VOCAB_SIZE = 128          # module default 5000 (scaled down)
EMBED_DIM = 32            # module default 512  (scaled down)
MAX_LEN = 8               # module default 77   (scaled down)
NUM_HEADS = 4             # module default 8    (must divide EMBED_DIM)
HEAD_DIM = EMBED_DIM // NUM_HEADS
FFN_DIM = 64              # module default 1024 (scaled down)
NUM_LAYERS = 2            # module default 4    (scaled down)
PROJ_HIDDEN = 64          # module default 1024 (scaled down)
SEGMENT_LENGTH = 16       # stand-in for Config.SEGMENT_LENGTH (undefined in source)
BATCH = 2
BL = BATCH * MAX_LEN
LN_EPS = 1e-5


# ---------------------------------- kernel -----------------------------------------
def _layernorm(x, gamma, beta):
    """PyTorch-style LayerNorm over the last dim (biased variance, eps inside rsqrt)."""
    mu = jnp.mean(x, axis=-1, keepdims=True)
    xc = x - mu
    var = jnp.mean(xc * xc, axis=-1, keepdims=True)
    inv = jax.lax.rsqrt(var + LN_EPS)
    return xc * inv * gamma + beta


def clip_fused_kernel(x_ref,                                  # (B*L, D) f32
                      wqkv_ref, bqkv_ref,                     # (NL, D, 3D) bf16, (NL, 1, 3D) f32
                      wo_ref, bo_ref,                         # (NL, D, D) bf16, (NL, 1, D) f32
                      g1_ref, be1_ref, g2_ref, be2_ref,       # LayerNorm params, f32
                      w1_ref, b1_ref, w2_ref, b2_ref,         # FFN weights
                      pw1_ref, pb1_ref, pw2_ref, pb2_ref,     # projection head
                      o_ref):                                 # (B, SEGMENT_LENGTH) f32
    f32 = jnp.float32
    bf16 = jnp.bfloat16

    x = x_ref[...]                                            # (BL, D) f32 residual stream

    for l in range(NUM_LAYERS):                               # static unroll over layers
        # ---- fused QKV projection: one lane-dense (BL, D) @ (D, 3D) bf16 matmul ----
        # (1/sqrt(head_dim) already folded into the Q columns host-side)
        qkv = jnp.dot(x.astype(bf16), wqkv_ref[l],
                      preferred_element_type=f32) + bqkv_ref[l]          # (BL, 3D) f32
        q3 = qkv[:, :EMBED_DIM].reshape(BATCH, MAX_LEN, EMBED_DIM)
        k3 = qkv[:, EMBED_DIM:2 * EMBED_DIM].reshape(BATCH, MAX_LEN, EMBED_DIM)
        v3 = qkv[:, 2 * EMBED_DIM:].reshape(BATCH, MAX_LEN, EMBED_DIM)

        # ---- merge heads into the batch axis: (B*H, L, head_dim) ----
        def merge(t3):
            return jnp.concatenate(
                [t3[:, :, h * HEAD_DIM:(h + 1) * HEAD_DIM] for h in range(NUM_HEADS)],
                axis=0)                                                   # n = h*B + b

        qm = merge(q3).astype(bf16)
        km = merge(k3).astype(bf16)
        vm = merge(v3).astype(bf16)

        # one batched MXU op for QK^T, one softmax, one batched PV
        s = jnp.einsum('nld,nmd->nlm', qm, km, preferred_element_type=f32)  # (BH, L, L)
        s = s - jnp.max(s, axis=-1, keepdims=True)
        p = jnp.exp(s)
        p = p * pl.reciprocal(jnp.sum(p, axis=-1, keepdims=True), approx=True)
        om = jnp.einsum('nlm,nmd->nld', p.astype(bf16), vm,
                        preferred_element_type=f32)                        # (BH, L, Hd)

        # in-register re-pack to lane-dense (BL, D); no scratch, no masked stores
        attn2d = jnp.concatenate(
            [om[h * BATCH:(h + 1) * BATCH].reshape(BL, HEAD_DIM)
             for h in range(NUM_HEADS)], axis=-1)                          # (BL, D) f32

        # single lane-dense output projection over all heads
        attn = jnp.dot(attn2d.astype(bf16), wo_ref[l],
                       preferred_element_type=f32) + bo_ref[l]             # (BL, D)

        # residual + LayerNorm1 (post-norm, PyTorch default norm_first=False)
        x = _layernorm(x + attn, g1_ref[l], be1_ref[l])

        # ---- feed-forward (Linear -> ReLU -> Linear), dropout = identity ----
        h1 = jnp.dot(x.astype(bf16), w1_ref[l], preferred_element_type=f32) + b1_ref[l]
        h1 = jnp.maximum(h1, 0.0)
        h2 = jnp.dot(h1.astype(bf16), w2_ref[l], preferred_element_type=f32) + b2_ref[l]

        # residual + LayerNorm2
        x = _layernorm(x + h2, g2_ref[l], be2_ref[l])

    # ---- projection head: chunked reduction over tokens ----
    # sum_t x[:, t, :] @ pw1[t*D:(t+1)*D, :]  ==  reshape(B, L*D) @ pw1 (row-major),
    # matching PyTorch's x.reshape(B, -1) @ W1, with no flatten relayout.
    x3 = x.reshape(BATCH, MAX_LEN, EMBED_DIM)
    hp = jnp.zeros((BATCH, PROJ_HIDDEN), f32)
    for t in range(MAX_LEN):
        hp = hp + jnp.dot(x3[:, t, :].astype(bf16),
                          pw1_ref[t * EMBED_DIM:(t + 1) * EMBED_DIM, :],
                          preferred_element_type=f32)
    hp = jnp.maximum(hp + pb1_ref[...], 0.0)
    o_ref[...] = jnp.dot(hp.astype(bf16), pw2_ref[...],
                         preferred_element_type=f32) + pb2_ref[...]


# --------------------------------- wrapper ------------------------------------------
def _fused_forward(x2d, p):
    return pl.pallas_call(
        clip_fused_kernel,
        out_shape=jax.ShapeDtypeStruct((BATCH, SEGMENT_LENGTH), jnp.float32),
    )(x2d,
      p['wqkv'], p['bqkv'], p['wo'], p['bo'],
      p['g1'], p['be1'], p['g2'], p['be2'],
      p['w1'], p['b1'], p['w2'], p['b2'],
      p['pw1'], p['pb1'], p['pw2'], p['pb2'])


@jax.jit
def clip_text_encoder(tokens, params):
    # TODO(synk): fuse the embedding gather into the kernel (scalar-prefetch row
    # gather) to avoid materializing x in HBM between XLA and the pallas_call.
    x = jnp.take(params['tok_emb'], tokens, axis=0)               # (B, L, D)
    x = x + params['pos_emb'][None, :, :]
    x2d = x.reshape(BATCH * MAX_LEN, EMBED_DIM).astype(jnp.float32)
    return _fused_forward(x2d, params)                            # (B, SEGMENT_LENGTH)


# ----------------------------- deterministic init -----------------------------------
def init_params(key):
    keys = iter(jax.random.split(key, 256))

    def randn(shape, scale=0.02):
        return scale * jax.random.normal(next(keys), shape)

    params = {
        'tok_emb': jax.random.normal(next(keys), (VOCAB_SIZE, EMBED_DIM)).astype(jnp.float32),
        'pos_emb': jnp.zeros((MAX_LEN, EMBED_DIM), jnp.float32),   # nn.Parameter(zeros)
    }

    attn_scale = 1.0 / math.sqrt(HEAD_DIM)
    stacks = {k: [] for k in ['wqkv', 'bqkv', 'wo', 'bo', 'g1', 'be1',
                              'g2', 'be2', 'w1', 'b1', 'w2', 'b2']}
    for _ in range(NUM_LAYERS):
        wq = randn((EMBED_DIM, EMBED_DIM)) * attn_scale   # fold softmax scale into Q proj
        bq = randn((1, EMBED_DIM)) * attn_scale
        wk, bk = randn((EMBED_DIM, EMBED_DIM)), randn((1, EMBED_DIM))
        wv, bv = randn((EMBED_DIM, EMBED_DIM)), randn((1, EMBED_DIM))
        stacks['wqkv'].append(jnp.concatenate([wq, wk, wv], axis=1).astype(jnp.bfloat16))
        stacks['bqkv'].append(jnp.concatenate([bq, bk, bv], axis=1).astype(jnp.float32))
        stacks['wo'].append(randn((EMBED_DIM, EMBED_DIM)).astype(jnp.bfloat16))
        stacks['bo'].append(randn((1, EMBED_DIM)).astype(jnp.float32))
        stacks['g1'].append(jnp.ones((1, EMBED_DIM), jnp.float32))
        stacks['be1'].append(jnp.zeros((1, EMBED_DIM), jnp.float32))
        stacks['g2'].append(jnp.ones((1, EMBED_DIM), jnp.float32))
        stacks['be2'].append(jnp.zeros((1, EMBED_DIM), jnp.float32))
        stacks['w1'].append(randn((EMBED_DIM, FFN_DIM)).astype(jnp.bfloat16))
        stacks['b1'].append(randn((1, FFN_DIM)).astype(jnp.float32))
        stacks['w2'].append(randn((FFN_DIM, EMBED_DIM)).astype(jnp.bfloat16))
        stacks['b2'].append(randn((1, EMBED_DIM)).astype(jnp.float32))
    for k, v in stacks.items():
        params[k] = jnp.stack(v, axis=0)                # leading layer axis

    params['pw1'] = randn((MAX_LEN * EMBED_DIM, PROJ_HIDDEN)).astype(jnp.bfloat16)
    params['pb1'] = randn((1, PROJ_HIDDEN)).astype(jnp.float32)
    params['pw2'] = randn((PROJ_HIDDEN, SEGMENT_LENGTH)).astype(jnp.bfloat16)
    params['pb2'] = randn((1, SEGMENT_LENGTH)).astype(jnp.float32)
    return params


# -------------------------------------- main ----------------------------------------
if __name__ == "__main__":
    root = jax.random.PRNGKey(0)
    k_tok, k_par = jax.random.split(root)
    tokens = jax.random.randint(k_tok, (BATCH, MAX_LEN), 0, VOCAB_SIZE, dtype=jnp.int32)
    params = init_params(k_par)

    out = clip_text_encoder(tokens, params)
    out = jax.block_until_ready(out)
    assert out.shape == (BATCH, SEGMENT_LENGTH), out.shape
    assert out.dtype == jnp.float32
    print("KERNEL_OK")
</pallas_src>

<mosaic_0001>
module attributes {stable_mosaic.version = 11 : i64} {
  func.func @clip_fused_kernel(%arg0: memref<16x32xf32, #tpu.memory_space<vmem>>, %arg1: memref<2x32x96xbf16, #tpu.memory_space<vmem>>, %arg2: memref<2x1x96xf32, #tpu.memory_space<vmem>>, %arg3: memref<2x32x32xbf16, #tpu.memory_space<vmem>>, %arg4: memref<2x1x32xf32, #tpu.memory_space<vmem>>, %arg5: memref<2x1x32xf32, #tpu.memory_space<vmem>>, %arg6: memref<2x1x32xf32, #tpu.memory_space<vmem>>, %arg7: memref<2x1x32xf32, #tpu.memory_space<vmem>>, %arg8: memref<2x1x32xf32, #tpu.memory_space<vmem>>, %arg9: memref<2x32x64xbf16, #tpu.memory_space<vmem>>, %arg10: memref<2x1x64xf32, #tpu.memory_space<vmem>>, %arg11: memref<2x64x32xbf16, #tpu.memory_space<vmem>>, %arg12: memref<2x1x32xf32, #tpu.memory_space<vmem>>, %arg13: memref<256x64xbf16, #tpu.memory_space<vmem>>, %arg14: memref<1x64xf32, #tpu.memory_space<vmem>>, %arg15: memref<64x16xbf16, #tpu.memory_space<vmem>>, %arg16: memref<1x16xf32, #tpu.memory_space<vmem>>, %arg17: memref<2x16xf32, #tpu.memory_space<vmem>>) attributes {dimension_semantics = [], scalar_prefetch = 0 : i64, scratch_operands = 0 : i64, tpu.core_type = #tpu.core_type<tc>} {
    %c0 = arith.constant 0 : index
    %c0_0 = arith.constant 0 : index
    %0 = vector.load %arg0[%c0, %c0_0] : memref<16x32xf32, #tpu.memory_space<vmem>>, vector<16x32xf32>
    %1 = arith.truncf %0 : vector<16x32xf32> to vector<16x32xbf16>
    %c0_1 = arith.constant 0 : index
    %c0_2 = arith.constant 0 : index
    %c0_3 = arith.constant 0 : index
    %2 = vector.load %arg1[%c0_1, %c0_2, %c0_3] : memref<2x32x96xbf16, #tpu.memory_space<vmem>>, vector<1x32x96xbf16>
    %3 = vector.shape_cast %2 : vector<1x32x96xbf16> to vector<32x96xbf16>
    %cst = arith.constant dense<0.000000e+00> : vector<16x96xf32>
    %4 = tpu.matmul %1, %3, %cst {dimension_numbers = #tpu.dot_dimension_numbers<[1], [0], [0], [1], [0, 0, 1, 1], [], []>} : vector<16x32xbf16>, vector<32x96xbf16>, vector<16x96xf32> -> vector<16x96xf32>
    %c0_4 = arith.constant 0 : index
    %c0_5 = arith.constant 0 : index
    %c0_6 = arith.constant 0 : index
    %5 = vector.load %arg2[%c0_4, %c0_5, %c0_6] : memref<2x1x96xf32, #tpu.memory_space<vmem>>, vector<1x1x96xf32>
    %6 = vector.shape_cast %5 : vector<1x1x96xf32> to vector<1x96xf32>
    %7 = vector.broadcast %6 : vector<1x96xf32> to vector<16x96xf32>
    %8 = arith.addf %4, %7 : vector<16x96xf32>
    %9 = vector.extract_strided_slice %8 {offsets = [0, 0], sizes = [16, 32], strides = [1, 1]} : vector<16x96xf32> to vector<16x32xf32>
    %10 = vector.shape_cast %9 : vector<16x32xf32> to vector<2x8x32xf32>
    %11 = vector.extract_strided_slice %8 {offsets = [0, 32], sizes = [16, 32], strides = [1, 1]} : vector<16x96xf32> to vector<16x32xf32>
    %12 = vector.shape_cast %11 : vector<16x32xf32> to vector<2x8x32xf32>
    %13 = vector.extract_strided_slice %8 {offsets = [0, 64], sizes = [16, 32], strides = [1, 1]} : vector<16x96xf32> to vector<16x32xf32>
    %14 = vector.shape_cast %13 : vector<16x32xf32> to vector<2x8x32xf32>
    %15 = vector.extract_strided_slice %10 {offsets = [0, 0, 0], sizes = [2, 8, 8], strides = [1, 1, 1]} : vector<2x8x32xf32> to vector<2x8x8xf32>
    %16 = vector.extract_strided_slice %10 {offsets = [0, 0, 8], sizes = [2, 8, 8], strides = [1, 1, 1]} : vector<2x8x32xf32> to vector<2x8x8xf32>
    %17 = vector.extract_strided_slice %10 {offsets = [0, 0, 16], sizes = [2, 8, 8], strides = [1, 1, 1]} : vector<2x8x32xf32> to vector<2x8x8xf32>
    %18 = vector.extract_strided_slice %10 {offsets = [0, 0, 24], sizes = [2, 8, 8], strides = [1, 1, 1]} : vector<2x8x32xf32> to vector<2x8x8xf32>
    %19 = tpu.concatenate %15, %16, %17, %18 in 0 : vector<2x8x8xf32>, vector<2x8x8xf32>, vector<2x8x8xf32>, vector<2x8x8xf32> -> vector<8x8x8xf32>
    %20 = arith.truncf %19 : vector<8x8x8xf32> to vector<8x8x8xbf16>
    %21 = vector.extract_strided_slice %12 {offsets = [0, 0, 0], sizes = [2, 8, 8], strides = [1, 1, 1]} : vector<2x8x32xf32> to vector<2x8x8xf32>
    %22 = vector.extract_strided_slice %12 {offsets = [0, 0, 8], sizes = [2, 8, 8], strides = [1, 1, 1]} : vector<2x8x32xf32> to vector<2x8x8xf32>
    %23 = vector.extract_strided_slice %12 {offsets = [0, 0, 16], sizes = [2, 8, 8], strides = [1, 1, 1]} : vector<2x8x32xf32> to vector<2x8x8xf32>
    %24 = vector.extract_strided_slice %12 {offsets = [0, 0, 24], sizes = [2, 8, 8], strides = [1, 1, 1]} : vector<2x8x32xf32> to vector<2x8x8xf32>
    %25 = tpu.concatenate %21, %22, %23, %24 in 0 : vector<2x8x8xf32>, vector<2x8x8xf32>, vector<2x8x8xf32>, vector<2x8x8xf32> -> vector<8x8x8xf32>
    %26 = arith.truncf %25 : vector<8x8x8xf32> to vector<8x8x8xbf16>
    %27 = vector.extract_strided_slice %14 {offsets = [0, 0, 0], sizes = [2, 8, 8], strides = [1, 1, 1]} : vector<2x8x32xf32> to vector<2x8x8xf32>
    %28 = vector.extract_strided_slice %14 {offsets = [0, 0, 8], sizes = [2, 8, 8], strides = [1, 1, 1]} : vector<2x8x32xf32> to vector<2x8x8xf32>
    %29 = vector.extract_strided_slice %14 {offsets = [0, 0, 16], sizes = [2, 8, 8], strides = [1, 1, 1]} : vector<2x8x32xf32> to vector<2x8x8xf32>
    %30 = vector.extract_strided_slice %14 {offsets = [0, 0, 24], sizes = [2, 8, 8], strides = [1, 1, 1]} : vector<2x8x32xf32> to vector<2x8x8xf32>
    %31 = tpu.concatenate %27, %28, %29, %30 in 0 : vector<2x8x8xf32>, vector<2x8x8xf32>, vector<2x8x8xf32>, vector<2x8x8xf32> -> vector<8x8x8xf32>
    %32 = arith.truncf %31 : vector<8x8x8xf32> to vector<8x8x8xbf16>
    "tpu.trace_start"() <{level = 10 : i32, message = "nld,nmd->nlm"}> : () -> ()
    %cst_7 = arith.constant dense<0.000000e+00> : vector<8x8x8xf32>
    %33 = tpu.matmul %20, %26, %cst_7 {dimension_numbers = #tpu.dot_dimension_numbers<[2], [2], [1], [1], [0, 0, 0, 1, 1, 1], [0], [0]>} : vector<8x8x8xbf16>, vector<8x8x8xbf16>, vector<8x8x8xf32> -> vector<8x8x8xf32>
    "tpu.trace_stop"() : () -> ()
    %cst_8 = arith.constant dense<0xFF800000> : vector<8x8xf32>
    %34 = vector.multi_reduction <maximumf>, %33, %cst_8 [2] : vector<8x8x8xf32> to vector<8x8xf32>
    %35 = vector.shape_cast %34 : vector<8x8xf32> to vector<8x8x1xf32>
    %36 = vector.broadcast %35 : vector<8x8x1xf32> to vector<8x8x8xf32>
    %37 = arith.subf %33, %36 : vector<8x8x8xf32>
    %38 = math.exp %37 : vector<8x8x8xf32>
    %cst_9 = arith.constant dense<0.000000e+00> : vector<8x8xf32>
    %39 = vector.multi_reduction <add>, %38, %cst_9 [2] : vector<8x8x8xf32> to vector<8x8xf32>
    %40 = vector.shape_cast %39 : vector<8x8xf32> to vector<8x8x1xf32>
    %41 = tpu.reciprocal %40 {approx = true} : vector<8x8x1xf32> -> vector<8x8x1xf32>
    %42 = vector.broadcast %41 : vector<8x8x1xf32> to vector<8x8x8xf32>
    %43 = arith.mulf %38, %42 : vector<8x8x8xf32>
    %44 = arith.truncf %43 : vector<8x8x8xf32> to vector<8x8x8xbf16>
    "tpu.trace_start"() <{level = 10 : i32, message = "nlm,nmd->nld"}> : () -> ()
    %cst_10 = arith.constant dense<0.000000e+00> : vector<8x8x8xf32>
    %45 = tpu.matmul %44, %32, %cst_10 {dimension_numbers = #tpu.dot_dimension_numbers<[2], [1], [1], [2], [0, 0, 0, 1, 1, 2], [0], [0]>} : vector<8x8x8xbf16>, vector<8x8x8xbf16>, vector<8x8x8xf32> -> vector<8x8x8xf32>
    "tpu.trace_stop"() : () -> ()
    %46 = vector.extract_strided_slice %45 {offsets = [0, 0, 0], sizes = [2, 8, 8], strides = [1, 1, 1]} : vector<8x8x8xf32> to vector<2x8x8xf32>
    %47 = vector.shape_cast %46 : vector<2x8x8xf32> to vector<16x8xf32>
    %48 = vector.extract_strided_slice %45 {offsets = [2, 0, 0], sizes = [2, 8, 8], strides = [1, 1, 1]} : vector<8x8x8xf32> to vector<2x8x8xf32>
    %49 = vector.shape_cast %48 : vector<2x8x8xf32> to vector<16x8xf32>
    %50 = vector.extract_strided_slice %45 {offsets = [4, 0, 0], sizes = [2, 8, 8], strides = [1, 1, 1]} : vector<8x8x8xf32> to vector<2x8x8xf32>
    %51 = vector.shape_cast %50 : vector<2x8x8xf32> to vector<16x8xf32>
    %52 = vector.extract_strided_slice %45 {offsets = [6, 0, 0], sizes = [2, 8, 8], strides = [1, 1, 1]} : vector<8x8x8xf32> to vector<2x8x8xf32>
    %53 = vector.shape_cast %52 : vector<2x8x8xf32> to vector<16x8xf32>
    %54 = tpu.concatenate %47, %49, %51, %53 in 1 : vector<16x8xf32>, vector<16x8xf32>, vector<16x8xf32>, vector<16x8xf32> -> vector<16x32xf32>
    %55 = arith.truncf %54 : vector<16x32xf32> to vector<16x32xbf16>
    %c0_11 = arith.constant 0 : index
    %c0_12 = arith.constant 0 : index
    %c0_13 = arith.constant 0 : index
    %56 = vector.load %arg3[%c0_11, %c0_12, %c0_13] : memref<2x32x32xbf16, #tpu.memory_space<vmem>>, vector<1x32x32xbf16>
    %57 = vector.shape_cast %56 : vector<1x32x32xbf16> to vector<32x32xbf16>
    %cst_14 = arith.constant dense<0.000000e+00> : vector<16x32xf32>
    %58 = tpu.matmul %55, %57, %cst_14 {dimension_numbers = #tpu.dot_dimension_numbers<[1], [0], [0], [1], [0, 0, 1, 1], [], []>} : vector<16x32xbf16>, vector<32x32xbf16>, vector<16x32xf32> -> vector<16x32xf32>
    %c0_15 = arith.constant 0 : index
    %c0_16 = arith.constant 0 : index
    %c0_17 = arith.constant 0 : index
    %59 = vector.load %arg4[%c0_15, %c0_16, %c0_17] : memref<2x1x32xf32, #tpu.memory_space<vmem>>, vector<1x1x32xf32>
    %60 = vector.shape_cast %59 : vector<1x1x32xf32> to vector<1x32xf32>
    %61 = vector.broadcast %60 : vector<1x32xf32> to vector<16x32xf32>
    %62 = arith.addf %58, %61 : vector<16x32xf32>
    %63 = arith.addf %0, %62 : vector<16x32xf32>
    %c0_18 = arith.constant 0 : index
    %c0_19 = arith.constant 0 : index
    %c0_20 = arith.constant 0 : index
    %64 = vector.load %arg5[%c0_18, %c0_19, %c0_20] : memref<2x1x32xf32, #tpu.memory_space<vmem>>, vector<1x1x32xf32>
    %65 = vector.shape_cast %64 : vector<1x1x32xf32> to vector<1x32xf32>
    %c0_21 = arith.constant 0 : index
    %c0_22 = arith.constant 0 : index
    %c0_23 = arith.constant 0 : index
    %66 = vector.load %arg6[%c0_21, %c0_22, %c0_23] : memref<2x1x32xf32, #tpu.memory_space<vmem>>, vector<1x1x32xf32>
    %67 = vector.shape_cast %66 : vector<1x1x32xf32> to vector<1x32xf32>
    %cst_24 = arith.constant dense<0.000000e+00> : vector<16xf32>
    %68 = vector.multi_reduction <add>, %63, %cst_24 [1] : vector<16x32xf32> to vector<16xf32>
    %69 = vector.shape_cast %68 : vector<16xf32> to vector<16x1xf32>
    %cst_25 = arith.constant 3.200000e+01 : f32
    %70 = vector.broadcast %cst_25 : f32 to vector<16x1xf32>
    %71 = arith.divf %69, %70 : vector<16x1xf32>
    %72 = vector.broadcast %71 : vector<16x1xf32> to vector<16x32xf32>
    %73 = arith.subf %63, %72 : vector<16x32xf32>
    %74 = arith.mulf %73, %73 : vector<16x32xf32>
    %cst_26 = arith.constant dense<0.000000e+00> : vector<16xf32>
    %75 = vector.multi_reduction <add>, %74, %cst_26 [1] : vector<16x32xf32> to vector<16xf32>
    %76 = vector.shape_cast %75 : vector<16xf32> to vector<16x1xf32>
    %cst_27 = arith.constant 3.200000e+01 : f32
    %77 = vector.broadcast %cst_27 : f32 to vector<16x1xf32>
    %78 = arith.divf %76, %77 : vector<16x1xf32>
    %cst_28 = arith.constant 9.99999974E-6 : f32
    %79 = vector.broadcast %cst_28 : f32 to vector<16x1xf32>
    %80 = arith.addf %78, %79 : vector<16x1xf32>
    %81 = math.rsqrt %80 : vector<16x1xf32>
    %82 = vector.broadcast %81 : vector<16x1xf32> to vector<16x32xf32>
    %83 = arith.mulf %73, %82 : vector<16x32xf32>
    %84 = vector.broadcast %65 : vector<1x32xf32> to vector<16x32xf32>
    %85 = arith.mulf %83, %84 : vector<16x32xf32>
    %86 = vector.broadcast %67 : vector<1x32xf32> to vector<16x32xf32>
    %87 = arith.addf %85, %86 : vector<16x32xf32>
    %88 = arith.truncf %87 : vector<16x32xf32> to vector<16x32xbf16>
    %c0_29 = arith.constant 0 : index
    %c0_30 = arith.constant 0 : index
    %c0_31 = arith.constant 0 : index
    %89 = vector.load %arg9[%c0_29, %c0_30, %c0_31] : memref<2x32x64xbf16, #tpu.memory_space<vmem>>, vector<1x32x64xbf16>
    %90 = vector.shape_cast %89 : vector<1x32x64xbf16> to vector<32x64xbf16>
    %cst_32 = arith.constant dense<0.000000e+00> : vector<16x64xf32>
    %91 = tpu.matmul %88, %90, %cst_32 {dimension_numbers = #tpu.dot_dimension_numbers<[1], [0], [0], [1], [0, 0, 1, 1], [], []>} : vector<16x32xbf16>, vector<32x64xbf16>, vector<16x64xf32> -> vector<16x64xf32>
    %c0_33 = arith.constant 0 : index
    %c0_34 = arith.constant 0 : index
    %c0_35 = arith.constant 0 : index
    %92 = vector.load %arg10[%c0_33, %c0_34, %c0_35] : memref<2x1x64xf32, #tpu.memory_space<vmem>>, vector<1x1x64xf32>
    %93 = vector.shape_cast %92 : vector<1x1x64xf32> to vector<1x64xf32>
    %94 = vector.broadcast %93 : vector<1x64xf32> to vector<16x64xf32>
    %95 = arith.addf %91, %94 : vector<16x64xf32>
    %cst_36 = arith.constant 0.000000e+00 : f32
    %96 = vector.broadcast %cst_36 : f32 to vector<16x64xf32>
    %97 = arith.maximumf %95, %96 : vector<16x64xf32>
    %98 = arith.truncf %97 : vector<16x64xf32> to vector<16x64xbf16>
    %c0_37 = arith.constant 0 : index
    %c0_38 = arith.constant 0 : index
    %c0_39 = arith.constant 0 : index
    %99 = vector.load %arg11[%c0_37, %c0_38, %c0_39] : memref<2x64x32xbf16, #tpu.memory_space<vmem>>, vector<1x64x32xbf16>
    %100 = vector.shape_cast %99 : vector<1x64x32xbf16> to vector<64x32xbf16>
    %cst_40 = arith.constant dense<0.000000e+00> : vector<16x32xf32>
    %101 = tpu.matmul %98, %100, %cst_40 {dimension_numbers = #tpu.dot_dimension_numbers<[1], [0], [0], [1], [0, 0, 1, 1], [], []>} : vector<16x64xbf16>, vector<64x32xbf16>, vector<16x32xf32> -> vector<16x32xf32>
    %c0_41 = arith.constant 0 : index
    %c0_42 = arith.constant 0 : index
    %c0_43 = arith.constant 0 : index
    %102 = vector.load %arg12[%c0_41, %c0_42, %c0_43] : memref<2x1x32xf32, #tpu.memory_space<vmem>>, vector<1x1x32xf32>
    %103 = vector.shape_cast %102 : vector<1x1x32xf32> to vector<1x32xf32>
    %104 = vector.broadcast %103 : vector<1x32xf32> to vector<16x32xf32>
    %105 = arith.addf %101, %104 : vector<16x32xf32>
    %106 = arith.addf %87, %105 : vector<16x32xf32>
    %c0_44 = arith.constant 0 : index
    %c0_45 = arith.constant 0 : index
    %c0_46 = arith.constant 0 : index
    %107 = vector.load %arg7[%c0_44, %c0_45, %c0_46] : memref<2x1x32xf32, #tpu.memory_space<vmem>>, vector<1x1x32xf32>
    %108 = vector.shape_cast %107 : vector<1x1x32xf32> to vector<1x32xf32>
    %c0_47 = arith.constant 0 : index
    %c0_48 = arith.constant 0 : index
    %c0_49 = arith.constant 0 : index
    %109 = vector.load %arg8[%c0_47, %c0_48, %c0_49] : memref<2x1x32xf32, #tpu.memory_space<vmem>>, vector<1x1x32xf32>
    %110 = vector.shape_cast %109 : vector<1x1x32xf32> to vector<1x32xf32>
    %cst_50 = arith.constant dense<0.000000e+00> : vector<16xf32>
    %111 = vector.multi_reduction <add>, %106, %cst_50 [1] : vector<16x32xf32> to vector<16xf32>
    %112 = vector.shape_cast %111 : vector<16xf32> to vector<16x1xf32>
    %cst_51 = arith.constant 3.200000e+01 : f32
    %113 = vector.broadcast %cst_51 : f32 to vector<16x1xf32>
    %114 = arith.divf %112, %113 : vector<16x1xf32>
    %115 = vector.broadcast %114 : vector<16x1xf32> to vector<16x32xf32>
    %116 = arith.subf %106, %115 : vector<16x32xf32>
    %117 = arith.mulf %116, %116 : vector<16x32xf32>
    %cst_52 = arith.constant dense<0.000000e+00> : vector<16xf32>
    %118 = vector.multi_reduction <add>, %117, %cst_52 [1] : vector<16x32xf32> to vector<16xf32>
    %119 = vector.shape_cast %118 : vector<16xf32> to vector<16x1xf32>
    %cst_53 = arith.constant 3.200000e+01 : f32
    %120 = vector.broadcast %cst_53 : f32 to vector<16x1xf32>
    %121 = arith.divf %119, %120 : vector<16x1xf32>
    %cst_54 = arith.constant 9.99999974E-6 : f32
    %122 = vector.broadcast %cst_54 : f32 to vector<16x1xf32>
    %123 = arith.addf %121, %122 : vector<16x1xf32>
    %124 = math.rsqrt %123 : vector<16x1xf32>
    %125 = vector.broadcast %124 : vector<16x1xf32> to vector<16x32xf32>
    %126 = arith.mulf %116, %125 : vector<16x32xf32>
    %127 = vector.broadcast %108 : vector<1x32xf32> to vector<16x32xf32>
    %128 = arith.mulf %126, %127 : vector<16x32xf32>
    %129 = vector.broadcast %110 : vector<1x32xf32> to vector<16x32xf32>
    %130 = arith.addf %128, %129 : vector<16x32xf32>
    %131 = arith.truncf %130 : vector<16x32xf32> to vector<16x32xbf16>
    %c1 = arith.constant 1 : index
    %c0_55 = arith.constant 0 : index
    %c0_56 = arith.constant 0 : index
    %132 = vector.load %arg1[%c1, %c0_55, %c0_56] : memref<2x32x96xbf16, #tpu.memory_space<vmem>>, vector<1x32x96xbf16>
    %133 = vector.shape_cast %132 : vector<1x32x96xbf16> to vector<32x96xbf16>
    %cst_57 = arith.constant dense<0.000000e+00> : vector<16x96xf32>
    %134 = tpu.matmul %131, %133, %cst_57 {dimension_numbers = #tpu.dot_dimension_numbers<[1], [0], [0], [1], [0, 0, 1, 1], [], []>} : vector<16x32xbf16>, vector<32x96xbf16>, vector<16x96xf32> -> vector<16x96xf32>
    %c1_58 = arith.constant 1 : index
    %c0_59 = arith.constant 0 : index
    %c0_60 = arith.constant 0 : index
    %135 = vector.load %arg2[%c1_58, %c0_59, %c0_60] : memref<2x1x96xf32, #tpu.memory_space<vmem>>, vector<1x1x96xf32>
    %136 = vector.shape_cast %135 : vector<1x1x96xf32> to vector<1x96xf32>
    %137 = vector.broadcast %136 : vector<1x96xf32> to vector<16x96xf32>
    %138 = arith.addf %134, %137 : vector<16x96xf32>
    %139 = vector.extract_strided_slice %138 {offsets = [0, 0], sizes = [16, 32], strides = [1, 1]} : vector<16x96xf32> to vector<16x32xf32>
    %140 = vector.shape_cast %139 : vector<16x32xf32> to vector<2x8x32xf32>
    %141 = vector.extract_strided_slice %138 {offsets = [0, 32], sizes = [16, 32], strides = [1, 1]} : vector<16x96xf32> to vector<16x32xf32>
    %142 = vector.shape_cast %141 : vector<16x32xf32> to vector<2x8x32xf32>
    %143 = vector.extract_strided_slice %138 {offsets = [0, 64], sizes = [16, 32], strides = [1, 1]} : vector<16x96xf32> to vector<16x32xf32>
    %144 = vector.shape_cast %143 : vector<16x32xf32> to vector<2x8x32xf32>
    %145 = vector.extract_strided_slice %140 {offsets = [0, 0, 0], sizes = [2, 8, 8], strides = [1, 1, 1]} : vector<2x8x32xf32> to vector<2x8x8xf32>
    %146 = vector.extract_strided_slice %140 {offsets = [0, 0, 8], sizes = [2, 8, 8], strides = [1, 1, 1]} : vector<2x8x32xf32> to vector<2x8x8xf32>
    %147 = vector.extract_strided_slice %140 {offsets = [0, 0, 16], sizes = [2, 8, 8], strides = [1, 1, 1]} : vector<2x8x32xf32> to vector<2x8x8xf32>
    %148 = vector.extract_strided_slice %140 {offsets = [0, 0, 24], sizes = [2, 8, 8], strides = [1, 1, 1]} : vector<2x8x32xf32> to vector<2x8x8xf32>
    %149 = tpu.concatenate %145, %146, %147, %148 in 0 : vector<2x8x8xf32>, vector<2x8x8xf32>, vector<2x8x8xf32>, vector<2x8x8xf32> -> vector<8x8x8xf32>
    %150 = arith.truncf %149 : vector<8x8x8xf32> to vector<8x8x8xbf16>
    %151 = vector.extract_strided_slice %142 {offsets = [0, 0, 0], sizes = [2, 8, 8], strides = [1, 1, 1]} : vector<2x8x32xf32> to vector<2x8x8xf32>
    %152 = vector.extract_strided_slice %142 {offsets = [0, 0, 8], sizes = [2, 8, 8], strides = [1, 1, 1]} : vector<2x8x32xf32> to vector<2x8x8xf32>
    %153 = vector.extract_strided_slice %142 {offsets = [0, 0, 16], sizes = [2, 8, 8], strides = [1, 1, 1]} : vector<2x8x32xf32> to vector<2x8x8xf32>
    %154 = vector.extract_strided_slice %142 {offsets = [0, 0, 24], sizes = [2, 8, 8], strides = [1, 1, 1]} : vector<2x8x32xf32> to vector<2x8x8xf32>
    %155 = tpu.concatenate %151, %152, %153, %154 in 0 : vector<2x8x8xf32>, vector<2x8x8xf32>, vector<2x8x8xf32>, vector<2x8x8xf32> -> vector<8x8x8xf32>
    %156 = arith.truncf %155 : vector<8x8x8xf32> to vector<8x8x8xbf16>
    %157 = vector.extract_strided_slice %144 {offsets = [0, 0, 0], sizes = [2, 8, 8], strides = [1, 1, 1]} : vector<2x8x32xf32> to vector<2x8x8xf32>
    %158 = vector.extract_strided_slice %144 {offsets = [0, 0, 8], sizes = [2, 8, 8], strides = [1, 1, 1]} : vector<2x8x32xf32> to vector<2x8x8xf32>
    %159 = vector.extract_strided_slice %144 {offsets = [0, 0, 16], sizes = [2, 8, 8], strides = [1, 1, 1]} : vector<2x8x32xf32> to vector<2x8x8xf32>
    %160 = vector.extract_strided_slice %144 {offsets = [0, 0, 24], sizes = [2, 8, 8], strides = [1, 1, 1]} : vector<2x8x32xf32> to vector<2x8x8xf32>
    %161 = tpu.concatenate %157, %158, %159, %160 in 0 : vector<2x8x8xf32>, vector<2x8x8xf32>, vector<2x8x8xf32>, vector<2x8x8xf32> -> vector<8x8x8xf32>
    %162 = arith.truncf %161 : vector<8x8x8xf32> to vector<8x8x8xbf16>
    "tpu.trace_start"() <{level = 10 : i32, message = "nld,nmd->nlm"}> : () -> ()
    %cst_61 = arith.constant dense<0.000000e+00> : vector<8x8x8xf32>
    %163 = tpu.matmul %150, %156, %cst_61 {dimension_numbers = #tpu.dot_dimension_numbers<[2], [2], [1], [1], [0, 0, 0, 1, 1, 1], [0], [0]>} : vector<8x8x8xbf16>, vector<8x8x8xbf16>, vector<8x8x8xf32> -> vector<8x8x8xf32>
    "tpu.trace_stop"() : () -> ()
    %cst_62 = arith.constant dense<0xFF800000> : vector<8x8xf32>
    %164 = vector.multi_reduction <maximumf>, %163, %cst_62 [2] : vector<8x8x8xf32> to vector<8x8xf32>
    %165 = vector.shape_cast %164 : vector<8x8xf32> to vector<8x8x1xf32>
    %166 = vector.broadcast %165 : vector<8x8x1xf32> to vector<8x8x8xf32>
    %167 = arith.subf %163, %166 : vector<8x8x8xf32>
    %168 = math.exp %167 : vector<8x8x8xf32>
    %cst_63 = arith.constant dense<0.000000e+00> : vector<8x8xf32>
    %169 = vector.multi_reduction <add>, %168, %cst_63 [2] : vector<8x8x8xf32> to vector<8x8xf32>
    %170 = vector.shape_cast %169 : vector<8x8xf32> to vector<8x8x1xf32>
    %171 = tpu.reciprocal %170 {approx = true} : vector<8x8x1xf32> -> vector<8x8x1xf32>
    %172 = vector.broadcast %171 : vector<8x8x1xf32> to vector<8x8x8xf32>
    %173 = arith.mulf %168, %172 : vector<8x8x8xf32>
    %174 = arith.truncf %173 : vector<8x8x8xf32> to vector<8x8x8xbf16>
    "tpu.trace_start"() <{level = 10 : i32, message = "nlm,nmd->nld"}> : () -> ()
    %cst_64 = arith.constant dense<0.000000e+00> : vector<8x8x8xf32>
    %175 = tpu.matmul %174, %162, %cst_64 {dimension_numbers = #tpu.dot_dimension_numbers<[2], [1], [1], [2], [0, 0, 0, 1, 1, 2], [0], [0]>} : vector<8x8x8xbf16>, vector<8x8x8xbf16>, vector<8x8x8xf32> -> vector<8x8x8xf32>
    "tpu.trace_stop"() : () -> ()
    %176 = vector.extract_strided_slice %175 {offsets = [0, 0, 0], sizes = [2, 8, 8], strides = [1, 1, 1]} : vector<8x8x8xf32> to vector<2x8x8xf32>
    %177 = vector.shape_cast %176 : vector<2x8x8xf32> to vector<16x8xf32>
    %178 = vector.extract_strided_slice %175 {offsets = [2, 0, 0], sizes = [2, 8, 8], strides = [1, 1, 1]} : vector<8x8x8xf32> to vector<2x8x8xf32>
    %179 = vector.shape_cast %178 : vector<2x8x8xf32> to vector<16x8xf32>
    %180 = vector.extract_strided_slice %175 {offsets = [4, 0, 0], sizes = [2, 8, 8], strides = [1, 1, 1]} : vector<8x8x8xf32> to vector<2x8x8xf32>
    %181 = vector.shape_cast %180 : vector<2x8x8xf32> to vector<16x8xf32>
    %182 = vector.extract_strided_slice %175 {offsets = [6, 0, 0], sizes = [2, 8, 8], strides = [1, 1, 1]} : vector<8x8x8xf32> to vector<2x8x8xf32>
    %183 = vector.shape_cast %182 : vector<2x8x8xf32> to vector<16x8xf32>
    %184 = tpu.concatenate %177, %179, %181, %183 in 1 : vector<16x8xf32>, vector<16x8xf32>, vector<16x8xf32>, vector<16x8xf32> -> vector<16x32xf32>
    %185 = arith.truncf %184 : vector<16x32xf32> to vector<16x32xbf16>
    %c1_65 = arith.constant 1 : index
    %c0_66 = arith.constant 0 : index
    %c0_67 = arith.constant 0 : index
    %186 = vector.load %arg3[%c1_65, %c0_66, %c0_67] : memref<2x32x32xbf16, #tpu.memory_space<vmem>>, vector<1x32x32xbf16>
    %187 = vector.shape_cast %186 : vector<1x32x32xbf16> to vector<32x32xbf16>
    %cst_68 = arith.constant dense<0.000000e+00> : vector<16x32xf32>
    %188 = tpu.matmul %185, %187, %cst_68 {dimension_numbers = #tpu.dot_dimension_numbers<[1], [0], [0], [1], [0, 0, 1, 1], [], []>} : vector<16x32xbf16>, vector<32x32xbf16>, vector<16x32xf32> -> vector<16x32xf32>
    %c1_69 = arith.constant 1 : index
    %c0_70 = arith.constant 0 : index
    %c0_71 = arith.constant 0 : index
    %189 = vector.load %arg4[%c1_69, %c0_70, %c0_71] : memref<2x1x32xf32, #tpu.memory_space<vmem>>, vector<1x1x32xf32>
    %190 = vector.shape_cast %189 : vector<1x1x32xf32> to vector<1x32xf32>
    %191 = vector.broadcast %190 : vector<1x32xf32> to vector<16x32xf32>
    %192 = arith.addf %188, %191 : vector<16x32xf32>
    %193 = arith.addf %130, %192 : vector<16x32xf32>
    %c1_72 = arith.constant 1 : index
    %c0_73 = arith.constant 0 : index
    %c0_74 = arith.constant 0 : index
    %194 = vector.load %arg5[%c1_72, %c0_73, %c0_74] : memref<2x1x32xf32, #tpu.memory_space<vmem>>, vector<1x1x32xf32>
    %195 = vector.shape_cast %194 : vector<1x1x32xf32> to vector<1x32xf32>
    %c1_75 = arith.constant 1 : index
    %c0_76 = arith.constant 0 : index
    %c0_77 = arith.constant 0 : index
    %196 = vector.load %arg6[%c1_75, %c0_76, %c0_77] : memref<2x1x32xf32, #tpu.memory_space<vmem>>, vector<1x1x32xf32>
    %197 = vector.shape_cast %196 : vector<1x1x32xf32> to vector<1x32xf32>
    %cst_78 = arith.constant dense<0.000000e+00> : vector<16xf32>
    %198 = vector.multi_reduction <add>, %193, %cst_78 [1] : vector<16x32xf32> to vector<16xf32>
    %199 = vector.shape_cast %198 : vector<16xf32> to vector<16x1xf32>
    %cst_79 = arith.constant 3.200000e+01 : f32
    %200 = vector.broadcast %cst_79 : f32 to vector<16x1xf32>
    %201 = arith.divf %199, %200 : vector<16x1xf32>
    %202 = vector.broadcast %201 : vector<16x1xf32> to vector<16x32xf32>
    %203 = arith.subf %193, %202 : vector<16x32xf32>
    %204 = arith.mulf %203, %203 : vector<16x32xf32>
    %cst_80 = arith.constant dense<0.000000e+00> : vector<16xf32>
    %205 = vector.multi_reduction <add>, %204, %cst_80 [1] : vector<16x32xf32> to vector<16xf32>
    %206 = vector.shape_cast %205 : vector<16xf32> to vector<16x1xf32>
    %cst_81 = arith.constant 3.200000e+01 : f32
    %207 = vector.broadcast %cst_81 : f32 to vector<16x1xf32>
    %208 = arith.divf %206, %207 : vector<16x1xf32>
    %cst_82 = arith.constant 9.99999974E-6 : f32
    %209 = vector.broadcast %cst_82 : f32 to vector<16x1xf32>
    %210 = arith.addf %208, %209 : vector<16x1xf32>
    %211 = math.rsqrt %210 : vector<16x1xf32>
    %212 = vector.broadcast %211 : vector<16x1xf32> to vector<16x32xf32>
    %213 = arith.mulf %203, %212 : vector<16x32xf32>
    %214 = vector.broadcast %195 : vector<1x32xf32> to vector<16x32xf32>
    %215 = arith.mulf %213, %214 : vector<16x32xf32>
    %216 = vector.broadcast %197 : vector<1x32xf32> to vector<16x32xf32>
    %217 = arith.addf %215, %216 : vector<16x32xf32>
    %218 = arith.truncf %217 : vector<16x32xf32> to vector<16x32xbf16>
    %c1_83 = arith.constant 1 : index
    %c0_84 = arith.constant 0 : index
    %c0_85 = arith.constant 0 : index
    %219 = vector.load %arg9[%c1_83, %c0_84, %c0_85] : memref<2x32x64xbf16, #tpu.memory_space<vmem>>, vector<1x32x64xbf16>
    %220 = vector.shape_cast %219 : vector<1x32x64xbf16> to vector<32x64xbf16>
    %cst_86 = arith.constant dense<0.000000e+00> : vector<16x64xf32>
    %221 = tpu.matmul %218, %220, %cst_86 {dimension_numbers = #tpu.dot_dimension_numbers<[1], [0], [0], [1], [0, 0, 1, 1], [], []>} : vector<16x32xbf16>, vector<32x64xbf16>, vector<16x64xf32> -> vector<16x64xf32>
    %c1_87 = arith.constant 1 : index
    %c0_88 = arith.constant 0 : index
    %c0_89 = arith.constant 0 : index
    %222 = vector.load %arg10[%c1_87, %c0_88, %c0_89] : memref<2x1x64xf32, #tpu.memory_space<vmem>>, vector<1x1x64xf32>
    %223 = vector.shape_cast %222 : vector<1x1x64xf32> to vector<1x64xf32>
    %224 = vector.broadcast %223 : vector<1x64xf32> to vector<16x64xf32>
    %225 = arith.addf %221, %224 : vector<16x64xf32>
    %cst_90 = arith.constant 0.000000e+00 : f32
    %226 = vector.broadcast %cst_90 : f32 to vector<16x64xf32>
    %227 = arith.maximumf %225, %226 : vector<16x64xf32>
    %228 = arith.truncf %227 : vector<16x64xf32> to vector<16x64xbf16>
    %c1_91 = arith.constant 1 : index
    %c0_92 = arith.constant 0 : index
    %c0_93 = arith.constant 0 : index
    %229 = vector.load %arg11[%c1_91, %c0_92, %c0_93] : memref<2x64x32xbf16, #tpu.memory_space<vmem>>, vector<1x64x32xbf16>
    %230 = vector.shape_cast %229 : vector<1x64x32xbf16> to vector<64x32xbf16>
    %cst_94 = arith.constant dense<0.000000e+00> : vector<16x32xf32>
    %231 = tpu.matmul %228, %230, %cst_94 {dimension_numbers = #tpu.dot_dimension_numbers<[1], [0], [0], [1], [0, 0, 1, 1], [], []>} : vector<16x64xbf16>, vector<64x32xbf16>, vector<16x32xf32> -> vector<16x32xf32>
    %c1_95 = arith.constant 1 : index
    %c0_96 = arith.constant 0 : index
    %c0_97 = arith.constant 0 : index
    %232 = vector.load %arg12[%c1_95, %c0_96, %c0_97] : memref<2x1x32xf32, #tpu.memory_space<vmem>>, vector<1x1x32xf32>
    %233 = vector.shape_cast %232 : vector<1x1x32xf32> to vector<1x32xf32>
    %234 = vector.broadcast %233 : vector<1x32xf32> to vector<16x32xf32>
    %235 = arith.addf %231, %234 : vector<16x32xf32>
    %236 = arith.addf %217, %235 : vector<16x32xf32>
    %c1_98 = arith.constant 1 : index
    %c0_99 = arith.constant 0 : index
    %c0_100 = arith.constant 0 : index
    %237 = vector.load %arg7[%c1_98, %c0_99, %c0_100] : memref<2x1x32xf32, #tpu.memory_space<vmem>>, vector<1x1x32xf32>
    %238 = vector.shape_cast %237 : vector<1x1x32xf32> to vector<1x32xf32>
    %c1_101 = arith.constant 1 : index
    %c0_102 = arith.constant 0 : index
    %c0_103 = arith.constant 0 : index
    %239 = vector.load %arg8[%c1_101, %c0_102, %c0_103] : memref<2x1x32xf32, #tpu.memory_space<vmem>>, vector<1x1x32xf32>
    %240 = vector.shape_cast %239 : vector<1x1x32xf32> to vector<1x32xf32>
    %cst_104 = arith.constant dense<0.000000e+00> : vector<16xf32>
    %241 = vector.multi_reduction <add>, %236, %cst_104 [1] : vector<16x32xf32> to vector<16xf32>
    %242 = vector.shape_cast %241 : vector<16xf32> to vector<16x1xf32>
    %cst_105 = arith.constant 3.200000e+01 : f32
    %243 = vector.broadcast %cst_105 : f32 to vector<16x1xf32>
    %244 = arith.divf %242, %243 : vector<16x1xf32>
    %245 = vector.broadcast %244 : vector<16x1xf32> to vector<16x32xf32>
    %246 = arith.subf %236, %245 : vector<16x32xf32>
    %247 = arith.mulf %246, %246 : vector<16x32xf32>
    %cst_106 = arith.constant dense<0.000000e+00> : vector<16xf32>
    %248 = vector.multi_reduction <add>, %247, %cst_106 [1] : vector<16x32xf32> to vector<16xf32>
    %249 = vector.shape_cast %248 : vector<16xf32> to vector<16x1xf32>
    %cst_107 = arith.constant 3.200000e+01 : f32
    %250 = vector.broadcast %cst_107 : f32 to vector<16x1xf32>
    %251 = arith.divf %249, %250 : vector<16x1xf32>
    %cst_108 = arith.constant 9.99999974E-6 : f32
    %252 = vector.broadcast %cst_108 : f32 to vector<16x1xf32>
    %253 = arith.addf %251, %252 : vector<16x1xf32>
    %254 = math.rsqrt %253 : vector<16x1xf32>
    %255 = vector.broadcast %254 : vector<16x1xf32> to vector<16x32xf32>
    %256 = arith.mulf %246, %255 : vector<16x32xf32>
    %257 = vector.broadcast %238 : vector<1x32xf32> to vector<16x32xf32>
    %258 = arith.mulf %256, %257 : vector<16x32xf32>
    %259 = vector.broadcast %240 : vector<1x32xf32> to vector<16x32xf32>
    %260 = arith.addf %258, %259 : vector<16x32xf32>
    %261 = vector.shape_cast %260 : vector<16x32xf32> to vector<2x8x32xf32>
    %cst_109 = arith.constant 0.000000e+00 : f32
    %262 = vector.broadcast %cst_109 : f32 to vector<2x64xf32>
    %263 = vector.extract_strided_slice %261 {offsets = [0, 0, 0], sizes = [2, 1, 32], strides = [1, 1, 1]} : vector<2x8x32xf32> to vector<2x1x32xf32>
    %264 = vector.shape_cast %263 : vector<2x1x32xf32> to vector<2x32xf32>
    %265 = arith.truncf %264 : vector<2x32xf32> to vector<2x32xbf16>
    %c0_110 = arith.constant 0 : index
    %c0_111 = arith.constant 0 : index
    %266 = vector.load %arg13[%c0_110, %c0_111] : memref<256x64xbf16, #tpu.memory_space<vmem>>, vector<32x64xbf16>
    %cst_112 = arith.constant dense<0.000000e+00> : vector<2x64xf32>
    %267 = tpu.matmul %265, %266, %cst_112 {dimension_numbers = #tpu.dot_dimension_numbers<[1], [0], [0], [1], [0, 0, 1, 1], [], []>} : vector<2x32xbf16>, vector<32x64xbf16>, vector<2x64xf32> -> vector<2x64xf32>
    %268 = arith.addf %262, %267 : vector<2x64xf32>
    %269 = vector.extract_strided_slice %261 {offsets = [0, 1, 0], sizes = [2, 1, 32], strides = [1, 1, 1]} : vector<2x8x32xf32> to vector<2x1x32xf32>
    %270 = vector.shape_cast %269 : vector<2x1x32xf32> to vector<2x32xf32>
    %271 = arith.truncf %270 : vector<2x32xf32> to vector<2x32xbf16>
    %c32 = arith.constant 32 : index
    %c0_113 = arith.constant 0 : index
    %272 = vector.load %arg13[%c32, %c0_113] : memref<256x64xbf16, #tpu.memory_space<vmem>>, vector<32x64xbf16>
    %cst_114 = arith.constant dense<0.000000e+00> : vector<2x64xf32>
    %273 = tpu.matmul %271, %272, %cst_114 {dimension_numbers = #tpu.dot_dimension_numbers<[1], [0], [0], [1], [0, 0, 1, 1], [], []>} : vector<2x32xbf16>, vector<32x64xbf16>, vector<2x64xf32> -> vector<2x64xf32>
    %274 = arith.addf %268, %273 : vector<2x64xf32>
    %275 = vector.extract_strided_slice %261 {offsets = [0, 2, 0], sizes = [2, 1, 32], strides = [1, 1, 1]} : vector<2x8x32xf32> to vector<2x1x32xf32>
    %276 = vector.shape_cast %275 : vector<2x1x32xf32> to vector<2x32xf32>
    %277 = arith.truncf %276 : vector<2x32xf32> to vector<2x32xbf16>
    %c64 = arith.constant 64 : index
    %c0_115 = arith.constant 0 : index
    %278 = vector.load %arg13[%c64, %c0_115] : memref<256x64xbf16, #tpu.memory_space<vmem>>, vector<32x64xbf16>
    %cst_116 = arith.constant dense<0.000000e+00> : vector<2x64xf32>
    %279 = tpu.matmul %277, %278, %cst_116 {dimension_numbers = #tpu.dot_dimension_numbers<[1], [0], [0], [1], [0, 0, 1, 1], [], []>} : vector<2x32xbf16>, vector<32x64xbf16>, vector<2x64xf32> -> vector<2x64xf32>
    %280 = arith.addf %274, %279 : vector<2x64xf32>
    %281 = vector.extract_strided_slice %261 {offsets = [0, 3, 0], sizes = [2, 1, 32], strides = [1, 1, 1]} : vector<2x8x32xf32> to vector<2x1x32xf32>
    %282 = vector.shape_cast %281 : vector<2x1x32xf32> to vector<2x32xf32>
    %283 = arith.truncf %282 : vector<2x32xf32> to vector<2x32xbf16>
    %c96 = arith.constant 96 : index
    %c0_117 = arith.constant 0 : index
    %284 = vector.load %arg13[%c96, %c0_117] : memref<256x64xbf16, #tpu.memory_space<vmem>>, vector<32x64xbf16>
    %cst_118 = arith.constant dense<0.000000e+00> : vector<2x64xf32>
    %285 = tpu.matmul %283, %284, %cst_118 {dimension_numbers = #tpu.dot_dimension_numbers<[1], [0], [0], [1], [0, 0, 1, 1], [], []>} : vector<2x32xbf16>, vector<32x64xbf16>, vector<2x64xf32> -> vector<2x64xf32>
    %286 = arith.addf %280, %285 : vector<2x64xf32>
    %287 = vector.extract_strided_slice %261 {offsets = [0, 4, 0], sizes = [2, 1, 32], strides = [1, 1, 1]} : vector<2x8x32xf32> to vector<2x1x32xf32>
    %288 = vector.shape_cast %287 : vector<2x1x32xf32> to vector<2x32xf32>
    %289 = arith.truncf %288 : vector<2x32xf32> to vector<2x32xbf16>
    %c128 = arith.constant 128 : index
    %c0_119 = arith.constant 0 : index
    %290 = vector.load %arg13[%c128, %c0_119] : memref<256x64xbf16, #tpu.memory_space<vmem>>, vector<32x64xbf16>
    %cst_120 = arith.constant dense<0.000000e+00> : vector<2x64xf32>
    %291 = tpu.matmul %289, %290, %cst_120 {dimension_numbers = #tpu.dot_dimension_numbers<[1], [0], [0], [1], [0, 0, 1, 1], [], []>} : vector<2x32xbf16>, vector<32x64xbf16>, vector<2x64xf32> -> vector<2x64xf32>
    %292 = arith.addf %286, %291 : vector<2x64xf32>
    %293 = vector.extract_strided_slice %261 {offsets = [0, 5, 0], sizes = [2, 1, 32], strides = [1, 1, 1]} : vector<2x8x32xf32> to vector<2x1x32xf32>
    %294 = vector.shape_cast %293 : vector<2x1x32xf32> to vector<2x32xf32>
    %295 = arith.truncf %294 : vector<2x32xf32> to vector<2x32xbf16>
    %c160 = arith.constant 160 : index
    %c0_121 = arith.constant 0 : index
    %296 = vector.load %arg13[%c160, %c0_121] : memref<256x64xbf16, #tpu.memory_space<vmem>>, vector<32x64xbf16>
    %cst_122 = arith.constant dense<0.000000e+00> : vector<2x64xf32>
    %297 = tpu.matmul %295, %296, %cst_122 {dimension_numbers = #tpu.dot_dimension_numbers<[1], [0], [0], [1], [0, 0, 1, 1], [], []>} : vector<2x32xbf16>, vector<32x64xbf16>, vector<2x64xf32> -> vector<2x64xf32>
    %298 = arith.addf %292, %297 : vector<2x64xf32>
    %299 = vector.extract_strided_slice %261 {offsets = [0, 6, 0], sizes = [2, 1, 32], strides = [1, 1, 1]} : vector<2x8x32xf32> to vector<2x1x32xf32>
    %300 = vector.shape_cast %299 : vector<2x1x32xf32> to vector<2x32xf32>
    %301 = arith.truncf %300 : vector<2x32xf32> to vector<2x32xbf16>
    %c192 = arith.constant 192 : index
    %c0_123 = arith.constant 0 : index
    %302 = vector.load %arg13[%c192, %c0_123] : memref<256x64xbf16, #tpu.memory_space<vmem>>, vector<32x64xbf16>
    %cst_124 = arith.constant dense<0.000000e+00> : vector<2x64xf32>
    %303 = tpu.matmul %301, %302, %cst_124 {dimension_numbers = #tpu.dot_dimension_numbers<[1], [0], [0], [1], [0, 0, 1, 1], [], []>} : vector<2x32xbf16>, vector<32x64xbf16>, vector<2x64xf32> -> vector<2x64xf32>
    %304 = arith.addf %298, %303 : vector<2x64xf32>
    %305 = vector.extract_strided_slice %261 {offsets = [0, 7, 0], sizes = [2, 1, 32], strides = [1, 1, 1]} : vector<2x8x32xf32> to vector<2x1x32xf32>
    %306 = vector.shape_cast %305 : vector<2x1x32xf32> to vector<2x32xf32>
    %307 = arith.truncf %306 : vector<2x32xf32> to vector<2x32xbf16>
    %c224 = arith.constant 224 : index
    %c0_125 = arith.constant 0 : index
    %308 = vector.load %arg13[%c224, %c0_125] : memref<256x64xbf16, #tpu.memory_space<vmem>>, vector<32x64xbf16>
    %cst_126 = arith.constant dense<0.000000e+00> : vector<2x64xf32>
    %309 = tpu.matmul %307, %308, %cst_126 {dimension_numbers = #tpu.dot_dimension_numbers<[1], [0], [0], [1], [0, 0, 1, 1], [], []>} : vector<2x32xbf16>, vector<32x64xbf16>, vector<2x64xf32> -> vector<2x64xf32>
    %310 = arith.addf %304, %309 : vector<2x64xf32>
    %c0_127 = arith.constant 0 : index
    %c0_128 = arith.constant 0 : index
    %311 = vector.load %arg14[%c0_127, %c0_128] : memref<1x64xf32, #tpu.memory_space<vmem>>, vector<1x64xf32>
    %312 = vector.broadcast %311 : vector<1x64xf32> to vector<2x64xf32>
    %313 = arith.addf %310, %312 : vector<2x64xf32>
    %cst_129 = arith.constant 0.000000e+00 : f32
    %314 = vector.broadcast %cst_129 : f32 to vector<2x64xf32>
    %315 = arith.maximumf %313, %314 : vector<2x64xf32>
    %316 = arith.truncf %315 : vector<2x64xf32> to vector<2x64xbf16>
    %c0_130 = arith.constant 0 : index
    %c0_131 = arith.constant 0 : index
    %317 = vector.load %arg15[%c0_130, %c0_131] : memref<64x16xbf16, #tpu.memory_space<vmem>>, vector<64x16xbf16>
    %cst_132 = arith.constant dense<0.000000e+00> : vector<2x16xf32>
    %318 = tpu.matmul %316, %317, %cst_132 {dimension_numbers = #tpu.dot_dimension_numbers<[1], [0], [0], [1], [0, 0, 1, 1], [], []>} : vector<2x64xbf16>, vector<64x16xbf16>, vector<2x16xf32> -> vector<2x16xf32>
    %c0_133 = arith.constant 0 : index
    %c0_134 = arith.constant 0 : index
    %319 = vector.load %arg16[%c0_133, %c0_134] : memref<1x16xf32, #tpu.memory_space<vmem>>, vector<1x16xf32>
    %320 = vector.broadcast %319 : vector<1x16xf32> to vector<2x16xf32>
    %321 = arith.addf %318, %320 : vector<2x16xf32>
    %c0_135 = arith.constant 0 : index
    %c0_136 = arith.constant 0 : index
    %322 = vector.load %arg17[%c0_135, %c0_136] : memref<2x16xf32, #tpu.memory_space<vmem>>, vector<2x16xf32>
    tpu.vector_store %arg17[%c0_135, %c0_136], %321 {strides = array<i32>} : memref<2x16xf32, #tpu.memory_space<vmem>>, vector<2x16xf32>,
    return
  }
}

</mosaic_0001>

<bundles_post_ra>
// kernel: clip_text_encoder.1
= control target key start
LH: loop header
LB: loop body
LE: loop exit
PB: predicated region body
PF: predicated region fallthrough
CT: control target
= control target key end

     0   :  { %s3108_s0 = inlined_call_operand.vmem [shape: f32[16,32], index: 0, kind: input, shape index: {}]   ;;  %s3109_s1 = inlined_call_operand.vmem [shape: bf16[2,32,96], index: 1, kind: input, shape index: {}]   ;;  %s3110_s2 = inlined_call_operand.vmem [shape: f32[2,1,96], index: 2, kind: input, shape index: {}]   ;;  %s3111_s3 = inlined_call_operand.vmem [shape: bf16[2,32,32], index: 3, kind: input, shape index: {}]   ;;  %s3112_s4 = inlined_call_operand.vmem [shape: f32[2,1,32], index: 4, kind: input, shape index: {}]   ;;  %s3113_s5 = inlined_call_operand.vmem [shape: f32[2,1,32], index: 5, kind: input, shape index: {}]   ;;  %s3114_s6 = inlined_call_operand.vmem [shape: f32[2,1,32], index: 6, kind: input, shape index: {}]   ;;  %s3115_s7 = inlined_call_operand.vmem [shape: f32[2,1,32], index: 7, kind: input, shape index: {}]   ;;  %s3116_s8 = inlined_call_operand.vmem [shape: f32[2,1,32], index: 8, kind: input, shape index: {}]   ;;  %s3117_s9 = inlined_call_operand.vmem [shape: bf16[2,32,64], index: 9, kind: input, shape index: {}]   ;;  %s3118_s10 = inlined_call_operand.vmem [shape: f32[2,1,64], index: 10, kind: input, shape index: {}]   ;;  %s3119_s11 = inlined_call_operand.vmem [shape: bf16[2,64,32], index: 11, kind: input, shape index: {}]   ;;  %s3120_s12 = inlined_call_operand.vmem [shape: f32[2,1,32], index: 12, kind: input, shape index: {}]   ;;  %s3121_s13 = inlined_call_operand.vmem [shape: bf16[256,64], index: 13, kind: input, shape index: {}]   ;;  %s3122_s14 = inlined_call_operand.vmem [shape: f32[1,64], index: 14, kind: input, shape index: {}]   ;;  %s3123_s15 = inlined_call_operand.vmem [shape: bf16[64,16], index: 15, kind: input, shape index: {}]   ;;  %s3124_s16 = inlined_call_operand.vmem [shape: f32[1,16], index: 16, kind: input, shape index: {}]   ;;  %s3125_s17 = inlined_call_operand.hbm [shape: f32[2,16], index: 17, kind: output, shape index: {}]  }
   0x1   :  { %3131 = sst [smem:[#allocation5_spill]] %s3108_s0 }
   0x2   :  { %3132 = sst [smem:[#allocation6_spill]] %s3109_s1 }
   0x3   :  { %s3133_s26 = sld [smem:[#allocation6_spill]]  ;;  %vm81_vm0 = vcmask 261120  }
   0x4   :  { %s3134_s30 = sld [smem:[#allocation5_spill]] }
   0x9   :  { %v2299_v0 = vld [vmem:[%s3133_s26 + $0x8] sm:$0xff]  ;;  %v2298_v1 = vld [vmem:[%s3133_s26] sm:$0xff] }
   0xa   :  { %v2613_v2 = vld [vmem:[%s3134_s30] sm:$0xff]  ;;  %v2618_v3 = vld [vmem:[%s3134_s30 + $0x8] sm:$0xff]  ;;  %91 = vmatpush.bf16.msra.mxu0 %v2299_v0 }
   0xb   :  { %v60_v4 = vpack.c.bf16 %v2618_v3, %v2613_v2 }
   0xe   :  { %92 = vmatpush.bf16.msra.mxu0 %v2298_v1 }
   0xf   :  { %22 = vsyncpa [#allocation3], 0  ;;  %v2378_v5 = vld [vmem:[%s3110_s2] ss:$0 sm:$0xff]  ;;  %s2504_s21 = smov 112   ;;  %s2505_s22 = smov 120  }
  0x10   :  { %s2506_s23 = smov 104   ;;  %s2507_s24 = smov 96   ;;  %vm132_vm1 = vcmask 64512   ;;  %vm421_vm2 = vcmask 1043456   ;;  %vm611_vm3 = vcmask 130048   ;;  %vm614_vm4 = vcmask 195584  }
  0x11   :  { %2069 = vmatmul.msk.bf16.vlgmr.msra.gmra.mxu0 %vm81_vm0, %v60_v4  ;;  %s2508_s25 = smov 64   ;;  %s3130_s27 = smov 8   ;;  %vm797_vm12 = vcmask 523264  }
  0x12   :  { %s3128_s28 = smov 16   ;;  %s3129_s29 = smov 24  }
  0x8e   :  { %v94_v6 = vpop.f32.mrf.mxu0 }
  0x8f   :  { %v95_v7 = vadd.f32 %v2378_v5, %v94_v6 }
  0x91   :  { %107 = vrot.lane.b32.xlu2 %v95_v7, %s2504_s21  ;;  %101 = vrot.lane.b32.xlu0 %v95_v7, %s2505_s22  ;;  %v119_v10 = vpack.c.bf16 %v95_v7, %v95_v7 }
  0x93   :  { %v128_v12 = vunpack.c.l.b16 %v119_v10 }
  0x95   :  { %v129_v14 = vpack.c.b16 %v128_v12, %v128_v12 }
  0x96   :  { %v96_v8 = vpop.f32.mrf.mxu0 }
  0x97   :  { %v97_v9 = vadd.f32 %v2378_v5, %v96_v8 }
  0x99   :  { %109 = vrot.lane.b32.xlu1 %v97_v9, %s2504_s21  ;;  %115 = vrot.lane.b32.xlu2 %v97_v9, %s2506_s23  ;;  %v120_v11 = vpack.c.bf16 %v97_v9, %v97_v9 }
  0x9a   :  { %103 = vrot.lane.b32.xlu0 %v97_v9, %s2505_s22 }
  0x9b   :  { %v153_v13 = vunpack.c.l.b16 %v120_v11 }
  0x9d   :  { %v154_v15 = vpack.c.b16 %v153_v13, %v153_v13 }
  0xa1   :  { %113 = vrot.lane.b32.xlu1 %v95_v7, %s2506_s23  ;;  %130 = vrot.lane.b32.xlu2 %v129_v14, %s2507_s24 }
  0xa2   :  { %155 = vrot.lane.b32.xlu0 %v154_v15, %s2507_s24 }
  0xeb   :  { %v108_v16 = vpop.permute.xlu2 %107 }
  0xec   :  { %v123_v32 = vpack.c.bf16 %v108_v16, %v108_v16 }
  0xee   :  { %v225_v38 = vunpack.c.l.b16 %v123_v32 }
  0xf0   :  { %v2650_v43 = vpack.c.b16 %v225_v38, %v225_v38 }
  0xf3   :  { %v116_v17 = vpop.permute.xlu2 %115 }
  0xf4   :  { %v2637_v30 = vpack.c.bf16 %v116_v17, %v116_v17 }
  0xf6   :  { %v297_v35 = vunpack.c.l.b16 %v2637_v30 }
  0xf8   :  { %v2646_v41 = vpack.c.b16 %v297_v35, %v297_v35 }
  0xfb   :  { %v131_v18 = vpop.permute.xlu2 %130 }
  0xfc   :  { %v137_v19 = vsel %vm132_vm1, %v131_v18, 0 }
  0xfd   :  { %146 = vmatpush.bf16.xpose.msra.mxu1 %v137_v19 }
 0x103   :  { %v102_v20 = vpop.permute.xlu0 %101 }
 0x104   :  { %v121_v21 = vpack.c.bf16 %v102_v20, %v102_v20  ;;  %2070 = vmatmul.msk.bf16.vlgmr.msra.gmra.mxu1 %vm132_vm1, %v119_v10 }
 0x106   :  { %v177_v22 = vunpack.c.l.b16 %v121_v21 }
 0x108   :  { %v178_v23 = vpack.c.b16 %v177_v22, %v177_v22 }
 0x10a   :  { %179 = vrot.lane.b32.xlu1 %v178_v23, %s2507_s24 }
 0x10b   :  { %v110_v24 = vpop.permute.xlu1 %109 }
 0x10c   :  { %v124_v25 = vpack.c.bf16 %v110_v24, %v110_v24  ;;  %v104_v26 = vpop.permute.xlu0 %103 }
 0x10d   :  { %v122_v27 = vpack.c.bf16 %v104_v26, %v104_v26 }
 0x10e   :  { %v249_v28 = vunpack.c.l.b16 %v124_v25 }
 0x10f   :  { %v201_v29 = vunpack.c.l.b16 %v122_v27 }
 0x110   :  { %v2639_v31 = vpack.c.b16 %v249_v28, %v249_v28 }
 0x111   :  { %v202_v33 = vpack.c.b16 %v201_v29, %v201_v29 }
 0x112   :  { %251 = vrot.lane.b32.xlu1 %v2639_v31, %s2507_s24 }
 0x113   :  { %203 = vrot.lane.b32.xlu0 %v202_v33, %s2507_s24  ;;  %v114_v34 = vpop.permute.xlu1 %113 }
 0x114   :  { %v125_v36 = vpack.c.bf16 %v114_v34, %v114_v34  ;;  %v156_v37 = vpop.permute.xlu0 %155 }
 0x115   :  { %v161_v39 = vsel %vm132_vm1, %v156_v37, 0 }
 0x116   :  { %v273_v40 = vunpack.c.l.b16 %v125_v36  ;;  %170 = vmatpush.bf16.xpose.msra.mxu2 %v161_v39 }
 0x118   :  { %v2648_v42 = vpack.c.b16 %v273_v40, %v273_v40 }
 0x11a   :  { %299 = vrot.lane.b32.xlu1 %v2646_v41, %s2507_s24  ;;  %275 = vrot.lane.b32.xlu2 %v2648_v42, %s2507_s24 }
 0x11b   :  { %227 = vrot.lane.b32.xlu0 %v2650_v43, %s2507_s24 }
 0x11d   :  { %2071 = vmatmul.msk.bf16.vlgmr.msra.gmra.mxu2 %vm132_vm1, %v120_v11 }
 0x122   :  { %438 = vrot.lane.b32.xlu1 %v154_v15, %s2508_s25  ;;  %459 = vrot.lane.b32.xlu2 %v178_v23, %s2508_s25 }
 0x123   :  { %416 = vrot.lane.b32.xlu0 %v129_v14, %s2508_s25 }
 0x174   :  { %v276_v44 = vpop.permute.xlu2 %275 }
 0x175   :  { %v281_v47 = vsel %vm132_vm1, %v276_v44, 0 }
 0x17c   :  { %v180_v45 = vpop.permute.xlu1 %179  ;;  %v460_v49 = vpop.permute.xlu2 %459 }
 0x17d   :  { %v185_v46 = vsel %vm132_vm1, %v180_v45, 0  ;;  %v465_v52 = vsel %vm421_vm2, %v460_v49, 0 }
 0x17e   :  { %194 = vmatpush.bf16.xpose.msra.mxu3 %v185_v46 }
 0x181   :  { %v148_v48 = vpop.f32.mrf.mxu1 }
 0x182   :  { %v320_v50 = vsel %vm132_vm1, %v148_v48, -inf }
 0x183   :  { %321 = vmax.xlane.f32.xlu1 %v320_v50 }
 0x184   :  { %v252_v51 = vpop.permute.xlu1 %251 }
 0x185   :  { %v204_v53 = vpop.permute.xlu0 %203  ;;  %2072 = vmatmul.msk.bf16.vlgmr.msra.gmra.mxu3 %vm132_vm1, %v121_v21  ;;  %v257_v54 = vsel %vm132_vm1, %v252_v51, 0 }
 0x186   :  { %290 = vmatpush.bf16.xpose.msrb.mxu3 %v281_v47  ;;  %v209_v55 = vsel %vm132_vm1, %v204_v53, 0  ;;  %266 = vmatpush.bf16.xpose.msrb.mxu2 %v257_v54 }
 0x187   :  { %218 = vmatpush.bf16.xpose.msrb.mxu0 %v209_v55 }
 0x189   :  { %v150_v56 = vpop.f32.mrf.mxu1 }
 0x18c   :  { %v300_v57 = vpop.permute.xlu1 %299 }
 0x18d   :  { %v305_v58 = vsel %vm132_vm1, %v300_v57, 0  ;;  %v228_v59 = vpop.permute.xlu0 %227  ;;  %2075 = vmatmul.msk.bf16.vlgmr.msrb.gmra.mxu2 %vm132_vm1, %v124_v25 }
 0x18e   :  { %474 = vmatpush.bf16.msra.mxu3 %v465_v52  ;;  %2073 = vmatmul.msk.bf16.vlgmr.msrb.gmra.mxu0 %vm132_vm1, %v122_v27  ;;  %v233_v60 = vsel %vm132_vm1, %v228_v59, 0 }
 0x18f   :  { %242 = vmatpush.bf16.xpose.msrb.mxu1 %v233_v60  ;;  %314 = vmatpush.bf16.xpose.msra.mxu0 %v305_v58 }
 0x194   :  { %v439_v61 = vpop.permute.xlu1 %438 }
 0x195   :  { %v444_v62 = vsel %vm421_vm2, %v439_v61, 0  ;;  %v417_v63 = vpop.permute.xlu0 %416  ;;  %2076 = vmatmul.msk.bf16.vlgmr.msrb.gmra.mxu3 %vm132_vm1, %v125_v36 }
 0x196   :  { %v423_v0 = vsel %vm421_vm2, %v417_v63, 0  ;;  %2074 = vmatmul.msk.bf16.vlgmr.msrb.gmra.mxu1 %vm132_vm1, %v123_v32  ;;  %453 = vmatpush.bf16.msra.mxu2 %v444_v62 }
 0x197   :  { %432 = vmatpush.bf16.msra.mxu1 %v423_v0 }
 0x19c   :  { %480 = vrot.lane.b32.xlu1 %v202_v33, %s2508_s25 }
 0x19e   :  { %2077 = vmatmul.msk.bf16.vlgmr.msra.gmra.mxu0 %vm132_vm1, %v2637_v30 }
 0x1a0   :  { %v172_v1 = vpop.f32.mrf.mxu2 }
 0x1a1   :  { %v323_v4 = vsel %vm132_vm1, %v172_v1, -inf }
 0x1a2   :  { %324 = vmax.xlane.f32.xlu2 %v323_v4 }
 0x1a8   :  { %v174_v5 = vpop.f32.mrf.mxu2 }
 0x1f6   :  { %v322_v6 = vpop.xlane.xlu1 %321 }
 0x1f7   :  { %v344_v7 = vsub.f32 %v148_v48, %v322_v6 }
 0x1f9   :  { %v352_v8 = vmul.f32 1.442695, %v344_v7 }
 0x1fb   :  { %2396 = vpow2.f32 %v352_v8 }
 0x201   :  { %v2397_v17 = vpop.eup %2396 }
 0x202   :  { %v368_v20 = vsel %vm132_vm1, %v2397_v17, 0.0 }
 0x208   :  { %v196_v9 = vpop.f32.mrf.mxu3 }
 0x209   :  { %v326_v10 = vsel %vm132_vm1, %v196_v9, -inf }
 0x20a   :  { %327 = vmax.xlane.f32.xlu0 %v326_v10 }
 0x20b   :  { %v220_v11 = vpop.f32.mrf.mxu0 }
 0x20c   :  { %v329_v12 = vsel %vm132_vm1, %v220_v11, -inf }
 0x20d   :  { %330 = vmax.xlane.f32.xlu2 %v329_v12 }
 0x20e   :  { %v481_v13 = vpop.permute.xlu1 %480 }
 0x20f   :  { %v486_v14 = vsel %vm421_vm2, %v481_v13, 0 }
 0x210   :  { %v198_v15 = vpop.f32.mrf.mxu3  ;;  %v268_v16 = vpop.f32.mrf.mxu2  ;;  %495 = vmatpush.bf16.msrb.mxu0 %v486_v14 }
 0x211   :  { %v335_v30 = vsel %vm132_vm1, %v268_v16, -inf }
 0x213   :  { %v222_v18 = vpop.f32.mrf.mxu0  ;;  %v244_v19 = vpop.f32.mrf.mxu1 }
 0x214   :  { %v332_v21 = vsel %vm132_vm1, %v244_v19, -inf }
 0x215   :  { %369 = vadd.xlane.f32.xlu2 %v368_v20  ;;  %333 = vmax.xlane.f32.xlu1 %v332_v21  ;;  %v325_v22 = vpop.xlane.xlu2 %324 }
 0x216   :  { %v345_v23 = vsub.f32 %v172_v1, %v325_v22 }
 0x218   :  { %v354_v24 = vmul.f32 1.442695, %v345_v23  ;;  %v270_v25 = vpop.f32.mrf.mxu2  ;;  %v292_v26 = vpop.f32.mrf.mxu3 }
 0x219   :  { %v338_v27 = vsel %vm132_vm1, %v292_v26, -inf }
 0x21a   :  { %2398 = vpow2.f32 %v354_v24  ;;  %339 = vmax.xlane.f32.xlu0 %v338_v27 }
 0x21b   :  { %v246_v28 = vpop.f32.mrf.mxu1  ;;  %v316_v29 = vpop.f32.mrf.mxu0 }
 0x21c   :  { %v341_v36 = vsel %vm132_vm1, %v316_v29, -inf }
 0x21d   :  { %336 = vmax.xlane.f32.xlu2 %v335_v30 }
 0x220   :  { %v2399_v32 = vpop.eup %2398  ;;  %v294_v33 = vpop.f32.mrf.mxu3 }
 0x221   :  { %v371_v34 = vsel %vm132_vm1, %v2399_v32, 0.0 }
 0x222   :  { %372 = vadd.xlane.f32.xlu0 %v371_v34 }
 0x223   :  { %v318_v35 = vpop.f32.mrf.mxu0 }
 0x225   :  { %342 = vmax.xlane.f32.xlu2 %v341_v36 }
 0x23d   :  { %522 = vrot.lane.b32.xlu2 %v2639_v31, %s2508_s25 }
 0x27d   :  { %v328_v40 = vpop.xlane.xlu0 %327 }
 0x27e   :  { %v346_v48 = vsub.f32 %v196_v9, %v328_v40 }
 0x280   :  { %v331_v37 = vpop.xlane.xlu2 %330  ;;  %v356_v31 = vmul.f32 1.442695, %v346_v48 }
 0x281   :  { %v347_v38 = vsub.f32 %v220_v11, %v331_v37 }
 0x283   :  { %v358_v39 = vmul.f32 1.442695, %v347_v38 }
 0x285   :  { %2400 = vpow2.f32 %v358_v39 }
 0x288   :  { %v334_v44 = vpop.xlane.xlu1 %333  ;;  %v370_v45 = vpop.xlane.xlu2 %369 }
 0x289   :  { %v348_v46 = vsub.f32 %v244_v19, %v334_v44  ;;  %2402 = vrcp.f32 %v370_v45 }
 0x28b   :  { %v2401_v47 = vpop.eup %2400  ;;  %v360_v49 = vmul.f32 1.442695, %v348_v46 }
 0x28c   :  { %v377_v50 = vsel %vm132_vm1, %v2401_v47, 0.0 }
 0x28d   :  { %2404 = vpow2.f32 %v360_v49  ;;  %378 = vadd.xlane.f32.xlu0 %v377_v50  ;;  %v340_v51 = vpop.xlane.xlu0 %339 }
 0x28e   :  { %v350_v52 = vsub.f32 %v292_v26, %v340_v51 }
 0x28f   :  { %v2403_v53 = vpop.eup %2402 }
 0x290   :  { %v400_v54 = vmul.f32 %v2403_v53, %v2397_v17  ;;  %v364_v55 = vmul.f32 1.442695, %v350_v52  ;;  %v337_v56 = vpop.xlane.xlu2 %336 }
 0x291   :  { %v349_v57 = vsub.f32 %v268_v16, %v337_v56 }
 0x292   :  { %v408_v58 = vpack.c.bf16 %v400_v54, %v400_v54  ;;  %2406 = vpow2.f32 %v364_v55 }
 0x293   :  { %v2693_v59 = vpop.eup %2404  ;;  %2408 = vpow2.f32 %v356_v31  ;;  %v362_v60 = vmul.f32 1.442695, %v349_v57 }
 0x294   :  { %2078 = vmatmul.msk.bf16.vlgmr.msra.gmra.mxu1 %vm132_vm1, %v408_v58  ;;  %v380_v61 = vsel %vm132_vm1, %v2693_v59, 0.0 }
 0x295   :  { %2410 = vpow2.f32 %v362_v60  ;;  %381 = vadd.xlane.f32.xlu1 %v380_v61  ;;  %v373_v62 = vpop.xlane.xlu0 %372 }
 0x296   :  { %2412 = vrcp.f32 %v373_v62 }
 0x298   :  { %v2407_v63 = vpop.eup %2406  ;;  %v343_v0 = vpop.xlane.xlu2 %342 }
 0x299   :  { %v2409_v1 = vpop.eup %2408  ;;  %v351_v4 = vsub.f32 %v316_v29, %v343_v0  ;;  %v386_v5 = vsel %vm132_vm1, %v2407_v63, 0.0 }
 0x29a   :  { %387 = vadd.xlane.f32.xlu2 %v386_v5  ;;  %v374_v9 = vsel %vm132_vm1, %v2409_v1, 0.0  ;;  %v2300_v5 = vld [vmem:[%s3111_s3] sm:$0xff] }
 0x29b   :  { %v2411_v6 = vpop.eup %2410  ;;  %v366_v7 = vmul.f32 1.442695, %v351_v4  ;;  %v2301_v4 = vld [vmem:[%s3111_s3 + $0x8] sm:$0xff] }
 0x29c   :  { %v2413_v8 = vpop.eup %2412  ;;  %v383_v10 = vsel %vm132_vm1, %v2411_v6, 0.0 }
 0x29d   :  { %v401_v11 = vmul.f32 %v2413_v8, %v2399_v32  ;;  %2414 = vpow2.f32 %v366_v7  ;;  %375 = vadd.xlane.f32.xlu1 %v374_v9  ;;  %384 = vadd.xlane.f32.xlu0 %v383_v10 }
 0x29f   :  { %v409_v12 = vpack.c.bf16 %v401_v11, %v401_v11 }
 0x2a0   :  { %v523_v13 = vpop.permute.xlu2 %522 }
 0x2a1   :  { %v528_v14 = vsel %vm421_vm2, %v523_v13, 0  ;;  %2079 = vmatmul.msk.bf16.vlgmr.msra.gmra.mxu2 %vm132_vm1, %v409_v12 }
 0x2a2   :  { %537 = vmatpush.bf16.msrb.mxu2 %v528_v14 }
 0x2a3   :  { %v2415_v15 = vpop.eup %2414 }
 0x2a4   :  { %v389_v16 = vsel %vm132_vm1, %v2415_v15, 0.0 }
 0x2a5   :  { %390 = vadd.xlane.f32.xlu0 %v389_v16 }
 0x2b2   :  { %564 = vrot.lane.b32.xlu2 %v2646_v41, %s2508_s25 }
 0x2b6   :  { %543 = vrot.lane.b32.xlu1 %v2648_v42, %s2508_s25 }
 0x2b9   :  { %501 = vrot.lane.b32.xlu0 %v2650_v43, %s2508_s25 }
 0x300   :  { %v379_v17 = vpop.xlane.xlu0 %378 }
 0x301   :  { %2416 = vrcp.f32 %v379_v17 }
 0x307   :  { %v2417_v18 = vpop.eup %2416 }
 0x308   :  { %v403_v19 = vmul.f32 %v2417_v18, %v2401_v47  ;;  %v382_v20 = vpop.xlane.xlu1 %381 }
 0x30a   :  { %v411_v21 = vpack.c.bf16 %v403_v19, %v403_v19 }
 0x30c   :  { %2081 = vmatmul.msk.bf16.vlgmr.msrb.gmra.mxu0 %vm132_vm1, %v411_v21 }
 0x30d   :  { %v388_v22 = vpop.xlane.xlu2 %387 }
 0x310   :  { %v376_v23 = vpop.xlane.xlu1 %375  ;;  %v385_v24 = vpop.xlane.xlu0 %384 }
 0x311   :  { %2418 = vrcp.f32 %v376_v23  ;;  %v2711_v25 = vpop.f32.mrf.mxu1 }
 0x312   :  { %2420 = vrcp.f32 %v385_v24 }
 0x315   :  { %v565_v41 = vpop.permute.xlu2 %564 }
 0x316   :  { %v570_v42 = vsel %vm421_vm2, %v565_v41, 0 }
 0x317   :  { %v2419_v26 = vpop.eup %2418  ;;  %579 = vmatpush.bf16.msra.mxu0 %v570_v42 }
 0x318   :  { %v2421_v43 = vpop.eup %2420  ;;  %v402_v27 = vmul.f32 %v2419_v26, %v2409_v1  ;;  %v391_v28 = vpop.xlane.xlu0 %390 }
 0x319   :  { %v405_v29 = vmul.f32 %v2421_v43, %v2411_v6  ;;  %2422 = vrcp.f32 %v391_v28  ;;  %v436_v30 = vpop.f32.mrf.mxu1  ;;  %v2512_v28 = vmov 32.0  }
 0x31a   :  { %v410_v32 = vpack.c.bf16 %v402_v27, %v402_v27  ;;  %2424 = vrcp.f32 %v388_v22  ;;  %v2379_v22 = vld [vmem:[%s3112_s4] ss:$0 sm:$0xff] }
 0x31b   :  { %v413_v33 = vpack.c.bf16 %v405_v29, %v405_v29  ;;  %2426 = vrcp.f32 %v382_v20 }
 0x31c   :  { %2080 = vmatmul.msk.bf16.vlgmr.msra.gmra.mxu3 %vm132_vm1, %v410_v32  ;;  %2428 = vrcp.f32 %v2512_v28 }
 0x31d   :  { %2083 = vmatmul.msk.bf16.vlgmr.msrb.gmra.mxu2 %vm132_vm1, %v413_v33 }
 0x31f   :  { %v2423_v34 = vpop.eup %2422 }
 0x320   :  { %v407_v35 = vmul.f32 %v2423_v34, %v2415_v15  ;;  %v2425_v37 = vpop.eup %2424 }
 0x321   :  { %v2427_v39 = vpop.eup %2426  ;;  %v406_v40 = vmul.f32 %v2425_v37, %v2407_v63 }
 0x322   :  { %v415_v36 = vpack.c.bf16 %v407_v35, %v407_v35  ;;  %v404_v46 = vmul.f32 %v2427_v39, %v2693_v59  ;;  %v2429_v29 = vpop.eup %2428 }
 0x323   :  { %v414_v47 = vpack.c.bf16 %v406_v40, %v406_v40  ;;  %v666_v30 = vmul.f32 32.0, %v2429_v29  ;;  %vm670_vm5 = vweird.f32 %v2429_v29 }
 0x324   :  { %2085 = vmatmul.msk.bf16.vlgmr.msra.gmra.mxu0 %vm132_vm1, %v415_v36  ;;  %v455_v38 = vpop.f32.mrf.mxu2  ;;  %v412_v51 = vpack.c.bf16 %v404_v46, %v404_v46 }
 0x325   :  { %v667_v32 = vsub.f32 1.0, %v666_v30 }
 0x327   :  { %v668_v33 = vmul.f32 %v2429_v29, %v667_v32 }
 0x328   :  { %v544_v44 = vpop.permute.xlu1 %543 }
 0x329   :  { %v549_v45 = vsel %vm421_vm2, %v544_v44, 0  ;;  %v669_v34 = vadd.f32 %v2429_v29, %v668_v33 }
 0x32a   :  { %558 = vmatpush.bf16.msrb.mxu3 %v549_v45 }
 0x32b   :  { %v502_v48 = vpop.permute.xlu0 %501  ;;  %v2746_v35 = vsel %vm670_vm5, %v2429_v29, %v669_v34 }
 0x32c   :  { %v507_v49 = vsel %vm421_vm2, %v502_v48, 0  ;;  %v457_v50 = vpop.f32.mrf.mxu2 }
 0x32d   :  { %516 = vmatpush.bf16.msrb.mxu1 %v507_v49  ;;  %2084 = vmatmul.msk.bf16.vlgmr.msrb.gmra.mxu3 %vm132_vm1, %v414_v47  ;;  %v2303_v47 = vld [vmem:[%s3117_s9 + $0x8] sm:$0xff] }
 0x32e   :  { %750 = vmatpush.bf16.msra.mxu2 %v2303_v47 }
 0x330   :  { %2082 = vmatmul.msk.bf16.vlgmr.msrb.gmra.mxu1 %vm132_vm1, %v412_v51  ;;  %v2302_v51 = vld [vmem:[%s3117_s9] sm:$0xff] }
 0x331   :  { %647 = vmatpush.bf16.msra.mxu1 %v2301_v4  ;;  %v2380_v4 = vld [vmem:[%s3113_s5] ss:$0 sm:$0xff] }
 0x332   :  { %751 = vmatpush.bf16.msra.mxu2 %v2302_v51 }
 0x335   :  { %648 = vmatpush.bf16.msra.mxu1 %v2300_v5 }
 0x389   :  { %v497_v52 = vpop.f32.mrf.mxu0 }
 0x391   :  { %v499_v53 = vpop.f32.mrf.mxu0 }
 0x39f   :  { %v476_v31 = vpop.f32.mrf.mxu3 }
 0x3a0   :  { %v2348_v54 = vpack.i.bf16 %v497_v52, %v476_v31  ;;  %v539_v55 = vpop.f32.mrf.mxu2 }
 0x3a1   :  { %v581_v56 = vpop.f32.mrf.mxu0 }
 0x3a2   :  { %2349 = vrot.lane.b32.xlu0 %v2348_v54, %s3130_s27 }
 0x3a7   :  { %v478_v57 = vpop.f32.mrf.mxu3 }
 0x3a8   :  { %v541_v58 = vpop.f32.mrf.mxu2 }
 0x3a9   :  { %v583_v59 = vpop.f32.mrf.mxu0 }
 0x3ad   :  { %v518_v60 = vpop.f32.mrf.mxu1 }
 0x3ae   :  { %v2353_v61 = vpack.i.bf16 %v539_v55, %v518_v60 }
 0x3b0   :  { %2354 = vrot.lane.b32.xlu1 %v2353_v61, %s3128_s28  ;;  %v560_v62 = vpop.f32.mrf.mxu3 }
 0x3b1   :  { %v2358_v63 = vpack.i.bf16 %v581_v56, %v560_v62 }
 0x3b3   :  { %2359 = vrot.lane.b32.xlu2 %v2358_v63, %s3129_s29 }
 0x3b5   :  { %v520_v0 = vpop.f32.mrf.mxu1 }
 0x3b8   :  { %v562_v1 = vpop.f32.mrf.mxu3 }
 0x40d   :  { %v2360_v9 = vpop.permute.xlu2 %2359 }
 0x40e   :  { %v2362_v13 = vunpack.i.h.bf16 %v2360_v9  ;;  %v2361_v14 = vunpack.i.l.bf16 %v2360_v9 }
 0x414   :  { %v2350_v6 = vpop.permute.xlu0 %2349 }
 0x415   :  { %v2352_v7 = vunpack.i.h.bf16 %v2350_v6  ;;  %v2351_v8 = vunpack.i.l.bf16 %v2350_v6 }
 0x417   :  { %v610_v15 = vsel %vm132_vm1, %v455_v38, %v2352_v7  ;;  %v609_v16 = vsel %vm132_vm1, %v2711_v25, %v2351_v8  ;;  %v2381_v8 = vld [vmem:[%s3114_s6] ss:$0 sm:$0xff] }
 0x422   :  { %v2355_v10 = vpop.permute.xlu1 %2354 }
 0x423   :  { %v2357_v11 = vunpack.i.h.bf16 %v2355_v10  ;;  %v2356_v12 = vunpack.i.l.bf16 %v2355_v10 }
 0x425   :  { %v613_v17 = vsel %vm611_vm3, %v610_v15, %v2357_v11  ;;  %v612_v18 = vsel %vm611_vm3, %v609_v16, %v2356_v12  ;;  %v2307_v15 = vld [vmem:[%s3119_s11 + $0x18] sm:$0xff]  ;;  %v2306_v16 = vld [vmem:[%s3119_s11 + $0x10] sm:$0xff] }
 0x426   :  { %v615_v19 = vsel %vm614_vm4, %v612_v18, %v2361_v14  ;;  %v616_v20 = vsel %vm614_vm4, %v613_v17, %v2362_v13  ;;  %805 = vmatpush.bf16.msra.mxu3 %v2307_v15  ;;  %v2305_v17 = vld [vmem:[%s3119_s11 + $0x8] sm:$0xff]  ;;  %v2304_v18 = vld [vmem:[%s3119_s11] sm:$0xff] }
 0x427   :  { %v617_v21 = vpack.c.bf16 %v616_v20, %v615_v19  ;;  %v2382_v20 = vld [vmem:[%s3118_s10] ss:$0 sm:$0xff] }
 0x429   :  { %2094 = vmatmul.msk.bf16.vlgmr.msra.gmra.mxu1 %vm81_vm0, %v617_v21 }
 0x42a   :  { %806 = vmatpush.bf16.msra.mxu3 %v2306_v16 }
 0x42e   :  { %807 = vmatpush.bf16.msra.mxu3 %v2305_v17 }
 0x432   :  { %808 = vmatpush.bf16.msra.mxu3 %v2304_v18 }
 0x4a6   :  { %v650_v23 = vpop.f32.mrf.mxu1 }
 0x4a7   :  { %v651_v24 = vadd.f32 %v2379_v22, %v650_v23 }
 0x4a9   :  { %v655_v41 = vadd.f32 %v651_v24, %v2613_v2 }
 0x4ab   :  { %v659_v25 = vsel %vm81_vm0, %v655_v41, 0.0 }
 0x4ac   :  { %660 = vadd.xlane.f32.xlu0 %v659_v25 }
 0x4ae   :  { %v652_v42 = vpop.f32.mrf.mxu1 }
 0x4af   :  { %v653_v26 = vadd.f32 %v2379_v22, %v652_v42  ;;  %v2383_v42 = vld [vmem:[%s3120_s12] ss:$0 sm:$0xff] }
 0x4b1   :  { %v656_v43 = vadd.f32 %v653_v26, %v2618_v3 }
 0x4b3   :  { %v662_v27 = vsel %vm81_vm0, %v656_v43, 0.0 }
 0x4b4   :  { %663 = vadd.xlane.f32.xlu1 %v662_v27 }
 0x51f   :  { %v661_v2 = vpop.xlane.xlu0 %660 }
 0x520   :  { %v672_v36 = vmul.f32 %v2746_v35, %v661_v2 }
 0x522   :  { %v674_v37 = vsub.f32 %v655_v41, %v672_v36 }
 0x524   :  { %v676_v38 = vmul.f32 %v674_v37, %v674_v37 }
 0x526   :  { %v678_v3 = vsel %vm81_vm0, %v676_v38, 0.0 }
 0x527   :  { %v664_v39 = vpop.xlane.xlu1 %663  ;;  %679 = vadd.xlane.f32.xlu2 %v678_v3 }
 0x528   :  { %v673_v40 = vmul.f32 %v2746_v35, %v664_v39 }
 0x52a   :  { %v675_v44 = vsub.f32 %v656_v43, %v673_v40 }
 0x52c   :  { %v677_v45 = vmul.f32 %v675_v44, %v675_v44 }
 0x52e   :  { %v681_v46 = vsel %vm81_vm0, %v677_v45, 0.0 }
 0x52f   :  { %682 = vadd.xlane.f32.xlu0 %v681_v46  ;;  %v2309_v46 = vld [vmem:[%s3133_s26 + $0x18] sm:$0xff] }
 0x530   :  { %905 = vmatpush.bf16.msrb.mxu0 %v2309_v46 }
 0x59a   :  { %v680_v48 = vpop.xlane.xlu2 %679 }
 0x59b   :  { %v684_v49 = vmul.f32 %v680_v48, %v2746_v35 }
 0x59d   :  { %v686_v50 = vadd.f32 1e-05, %v684_v49 }
 0x59f   :  { %2430 = vrsqrt.f32 %v686_v50  ;;  %vm694_vm7 = vweird.f32 %v686_v50 }
 0x5a2   :  { %v683_v52 = vpop.xlane.xlu0 %682 }
 0x5a3   :  { %v685_v53 = vmul.f32 %v683_v52, %v2746_v35 }
 0x5a5   :  { %v2431_v31 = vpop.eup %2430  ;;  %v687_v54 = vadd.f32 1e-05, %v685_v53 }
 0x5a6   :  { %v689_v55 = vmul.f32 %v2431_v31, %v686_v50  ;;  %vm695_vm6 = vweird.f32 %v2431_v31  ;;  %v2308_v50 = vld [vmem:[%s3133_s26 + $0x10] sm:$0xff] }
 0x5a7   :  { %2432 = vrsqrt.f32 %v687_v54  ;;  %vm696_vm8 = vmor %vm694_vm7, %vm695_vm6  ;;  %vm704_vm10 = vweird.f32 %v687_v54  ;;  %906 = vmatpush.bf16.msrb.mxu0 %v2308_v50 }
 0x5a8   :  { %v690_v56 = vmul.f32 %v2431_v31, %v689_v55 }
 0x5aa   :  { %v691_v57 = vmul.f32 0.5, %v690_v56 }
 0x5ac   :  { %v692_v58 = vsub.f32 1.5, %v691_v57 }
 0x5ad   :  { %v2433_v59 = vpop.eup %2432 }
 0x5ae   :  { %v693_v60 = vmul.f32 %v2431_v31, %v692_v58  ;;  %v699_v61 = vmul.f32 %v2433_v59, %v687_v54  ;;  %vm705_vm9 = vweird.f32 %v2433_v59 }
 0x5af   :  { %vm706_vm11 = vmor %vm704_vm10, %vm705_vm9 }
 0x5b0   :  { %v700_v62 = vmul.f32 %v2433_v59, %v699_v61  ;;  %v697_v63 = vsel %vm696_vm8, %v2431_v31, %v693_v60 }
 0x5b1   :  { %v708_v5 = vmul.f32 %v697_v63, %v674_v37 }
 0x5b2   :  { %v701_v0 = vmul.f32 0.5, %v700_v62 }
 0x5b3   :  { %v713_v9 = vmul.f32 %v2380_v4, %v708_v5 }
 0x5b4   :  { %v702_v1 = vsub.f32 1.5, %v701_v0 }
 0x5b5   :  { %v718_v12 = vadd.f32 %v2381_v8, %v713_v9 }
 0x5b6   :  { %v703_v6 = vmul.f32 %v2433_v59, %v702_v1  ;;  %v2384_v1 = vld [vmem:[%s3115_s7] ss:$0 sm:$0xff] }
 0x5b8   :  { %v707_v7 = vsel %vm706_vm11, %v2433_v59, %v703_v6 }
 0x5b9   :  { %v709_v10 = vmul.f32 %v707_v7, %v675_v44  ;;  %v2385_v7 = vld [vmem:[%s3116_s8] ss:$0 sm:$0xff] }
 0x5bb   :  { %v714_v11 = vmul.f32 %v2380_v4, %v709_v10 }
 0x5bd   :  { %v719_v13 = vadd.f32 %v2381_v8, %v714_v11 }
 0x5bf   :  { %v720_v14 = vpack.c.bf16 %v719_v13, %v718_v12 }
 0x5c1   :  { %2103 = vmatmul.msk.bf16.vlgmr.msra.gmra.mxu2 %vm81_vm0, %v720_v14  ;;  %v2386_v14 = vld [vmem:[%s3110_s2 + $0x1] ss:$0 sm:$0xff]  ;;  %s3135_s2 = smov 8  }
 0x644   :  { %v753_v19 = vpop.f32.mrf.mxu2 }
 0x645   :  { %v754_v21 = vadd.f32 %v2382_v20, %v753_v19 }
 0x647   :  { %v758_v24 = vmax.f32 %v754_v21, 0.0 }
 0x64c   :  { %v755_v22 = vpop.f32.mrf.mxu2 }
 0x64d   :  { %v756_v23 = vadd.f32 %v2382_v20, %v755_v22 }
 0x64f   :  { %v759_v41 = vmax.f32 %v756_v23, 0.0 }
 0x651   :  { %v760_v25 = vpack.c.bf16 %v759_v41, %v758_v24 }
 0x653   :  { %2120 = vmatmul.msk.bf16.vlgmr.msra.gmra.mxu3 %vm797_vm12, %v760_v25 }
 0x6d6   :  { %v810_v26 = vpop.f32.mrf.mxu3 }
 0x6d7   :  { %v811_v43 = vadd.f32 %v2383_v42, %v810_v26 }
 0x6d9   :  { %v815_v27 = vadd.f32 %v811_v43, %v718_v12 }
 0x6db   :  { %v819_v28 = vsel %vm81_vm0, %v815_v27, 0.0 }
 0x6dc   :  { %820 = vadd.xlane.f32.xlu1 %v819_v28 }
 0x6de   :  { %v812_v29 = vpop.f32.mrf.mxu3 }
 0x6df   :  { %v813_v30 = vadd.f32 %v2383_v42, %v812_v29 }
 0x6e1   :  { %v816_v32 = vadd.f32 %v813_v30, %v719_v13 }
 0x6e3   :  { %v822_v33 = vsel %vm81_vm0, %v816_v32, 0.0 }
 0x6e4   :  { %823 = vadd.xlane.f32.xlu2 %v822_v33 }
 0x74f   :  { %v821_v34 = vpop.xlane.xlu1 %820 }
 0x750   :  { %v825_v2 = vmul.f32 %v821_v34, %v2746_v35 }
 0x752   :  { %v827_v36 = vsub.f32 %v815_v27, %v825_v2 }
 0x754   :  { %v829_v37 = vmul.f32 %v827_v36, %v827_v36 }
 0x756   :  { %v831_v38 = vsel %vm81_vm0, %v829_v37, 0.0 }
 0x757   :  { %v824_v3 = vpop.xlane.xlu2 %823  ;;  %832 = vadd.xlane.f32.xlu0 %v831_v38 }
 0x758   :  { %v826_v39 = vmul.f32 %v824_v3, %v2746_v35 }
 0x75a   :  { %v828_v40 = vsub.f32 %v816_v32, %v826_v39 }
 0x75c   :  { %v830_v44 = vmul.f32 %v828_v40, %v828_v40 }
 0x75e   :  { %v834_v45 = vsel %vm81_vm0, %v830_v44, 0.0 }
 0x75f   :  { %835 = vadd.xlane.f32.xlu1 %v834_v45 }
 0x7ca   :  { %v833_v47 = vpop.xlane.xlu0 %832 }
 0x7cb   :  { %v837_v48 = vmul.f32 %v833_v47, %v2746_v35 }
 0x7cd   :  { %v839_v49 = vadd.f32 1e-05, %v837_v48 }
 0x7cf   :  { %2434 = vrsqrt.f32 %v839_v49  ;;  %vm847_vm14 = vweird.f32 %v839_v49 }
 0x7d2   :  { %v836_v51 = vpop.xlane.xlu1 %835 }
 0x7d3   :  { %v838_v52 = vmul.f32 %v836_v51, %v2746_v35 }
 0x7d5   :  { %v2435_v53 = vpop.eup %2434  ;;  %v840_v31 = vadd.f32 1e-05, %v838_v52 }
 0x7d6   :  { %v842_v54 = vmul.f32 %v2435_v53, %v839_v49  ;;  %vm848_vm13 = vweird.f32 %v2435_v53 }
 0x7d7   :  { %2436 = vrsqrt.f32 %v840_v31  ;;  %vm849_vm15 = vmor %vm847_vm14, %vm848_vm13  ;;  %vm857_vm6 = vweird.f32 %v840_v31 }
 0x7d8   :  { %v843_v55 = vmul.f32 %v2435_v53, %v842_v54 }
 0x7da   :  { %v844_v56 = vmul.f32 0.5, %v843_v55 }
 0x7dc   :  { %v845_v57 = vsub.f32 1.5, %v844_v56 }
 0x7dd   :  { %v2437_v58 = vpop.eup %2436 }
 0x7de   :  { %v846_v59 = vmul.f32 %v2435_v53, %v845_v57  ;;  %v852_v60 = vmul.f32 %v2437_v58, %v840_v31  ;;  %vm858_vm5 = vweird.f32 %v2437_v58 }
 0x7df   :  { %vm859_vm7 = vmor %vm857_vm6, %vm858_vm5  ;;  %vm1700_vm6 = vcmask 1041409  }
 0x7e0   :  { %v853_v61 = vmul.f32 %v2437_v58, %v852_v60  ;;  %v850_v62 = vsel %vm849_vm15, %v2435_v53, %v846_v59 }
 0x7e1   :  { %v861_v4 = vmul.f32 %v850_v62, %v827_v36 }
 0x7e2   :  { %v854_v63 = vmul.f32 0.5, %v853_v61 }
 0x7e3   :  { %v866_v8 = vmul.f32 %v2384_v1, %v861_v4 }
 0x7e4   :  { %v855_v0 = vsub.f32 1.5, %v854_v63 }
 0x7e5   :  { %v2806_v11 = vadd.f32 %v2385_v7, %v866_v8 }
 0x7e6   :  { %v856_v5 = vmul.f32 %v2437_v58, %v855_v0 }
 0x7e8   :  { %v860_v6 = vsel %vm859_vm7, %v2437_v58, %v856_v5 }
 0x7e9   :  { %v862_v9 = vmul.f32 %v860_v6, %v828_v40 }
 0x7eb   :  { %v867_v10 = vmul.f32 %v2384_v1, %v862_v9 }
 0x7ed   :  { %v2808_v12 = vadd.f32 %v2385_v7, %v867_v10 }
 0x7ef   :  { %v873_v13 = vpack.c.bf16 %v2808_v12, %v2806_v11 }
 0x7f1   :  { %2134 = vmatmul.msk.bf16.vlgmr.msrb.gmra.mxu0 %vm81_vm0, %v873_v13 }
 0x86e   :  { %v908_v15 = vpop.f32.mrf.mxu0 }
 0x86f   :  { %v909_v16 = vadd.f32 %v2386_v14, %v908_v15 }
 0x871   :  { %915 = vrot.lane.b32.xlu2 %v909_v16, %s2505_s22  ;;  %v933_v20 = vpack.c.bf16 %v909_v16, %v909_v16 }
 0x873   :  { %v942_v22 = vunpack.c.l.b16 %v933_v20 }
 0x875   :  { %v2824_v24 = vpack.c.b16 %v942_v22, %v942_v22 }
 0x876   :  { %v910_v17 = vpop.f32.mrf.mxu0 }
 0x877   :  { %v911_v18 = vadd.f32 %v2386_v14, %v910_v17 }
 0x879   :  { %923 = vrot.lane.b32.xlu1 %v911_v18, %s2504_s21  ;;  %917 = vrot.lane.b32.xlu0 %v911_v18, %s2505_s22  ;;  %v934_v19 = vpack.c.bf16 %v911_v18, %v911_v18  ;;  %s3137_s22 = smov 16  }
 0x87a   :  { %921 = vrot.lane.b32.xlu2 %v909_v16, %s2504_s21  ;;  %s3136_s21 = smov 24  }
 0x87b   :  { %v966_v21 = vunpack.c.l.b16 %v934_v19 }
 0x87d   :  { %v2822_v23 = vpack.c.b16 %v966_v21, %v966_v21 }
 0x881   :  { %929 = vrot.lane.b32.xlu1 %v911_v18, %s2506_s23  ;;  %927 = vrot.lane.b32.xlu0 %v909_v16, %s2506_s23 }
 0x889   :  { %968 = vrot.lane.b32.xlu0 %v2822_v23, %s2507_s24  ;;  %944 = vrot.lane.b32.xlu1 %v2824_v24, %s2507_s24 }
 0x8cb   :  { %v916_v41 = vpop.permute.xlu2 %915 }
 0x8cc   :  { %v935_v25 = vpack.c.bf16 %v916_v41, %v916_v41 }
 0x8ce   :  { %v990_v42 = vunpack.c.l.b16 %v935_v25 }
 0x8d0   :  { %v2830_v26 = vpack.c.b16 %v990_v42, %v990_v42 }
 0x8d2   :  { %992 = vrot.lane.b32.xlu2 %v2830_v26, %s2507_s24 }
 0x8d4   :  { %v922_v30 = vpop.permute.xlu2 %921 }
 0x8d5   :  { %v937_v34 = vpack.c.bf16 %v922_v30, %v922_v30 }
 0x8d7   :  { %v1038_v3 = vunpack.c.l.b16 %v937_v34 }
 0x8d9   :  { %v2842_v46 = vpack.c.b16 %v1038_v3, %v1038_v3 }
 0x8eb   :  { %v924_v43 = vpop.permute.xlu1 %923  ;;  %v918_v27 = vpop.permute.xlu0 %917 }
 0x8ec   :  { %v938_v28 = vpack.c.bf16 %v924_v43, %v924_v43  ;;  %v936_v29 = vpack.c.bf16 %v918_v27, %v918_v27 }
 0x8ee   :  { %v1062_v32 = vunpack.c.l.b16 %v938_v28  ;;  %v1014_v33 = vunpack.c.l.b16 %v936_v29 }
 0x8f0   :  { %v2834_v2 = vpack.c.b16 %v1062_v32, %v1062_v32  ;;  %v2836_v36 = vpack.c.b16 %v1014_v33, %v1014_v33 }
 0x8f2   :  { %1016 = vrot.lane.b32.xlu0 %v2836_v36, %s2507_s24  ;;  %1064 = vrot.lane.b32.xlu2 %v2834_v2, %s2507_s24 }
 0x8f3   :  { %v930_v37 = vpop.permute.xlu1 %929  ;;  %v928_v38 = vpop.permute.xlu0 %927 }
 0x8f4   :  { %v940_v39 = vpack.c.bf16 %v930_v37, %v930_v37  ;;  %v939_v40 = vpack.c.bf16 %v928_v38, %v928_v38 }
 0x8f6   :  { %v1110_v44 = vunpack.c.l.b16 %v940_v39  ;;  %v1086_v45 = vunpack.c.l.b16 %v939_v40 }
 0x8f8   :  { %v2844_v47 = vpack.c.b16 %v1110_v44, %v1110_v44  ;;  %v2846_v48 = vpack.c.b16 %v1086_v45, %v1086_v45 }
 0x8fa   :  { %1112 = vrot.lane.b32.xlu2 %v2844_v47, %s2507_s24  ;;  %1040 = vrot.lane.b32.xlu0 %v2842_v46, %s2507_s24 }
 0x8fb   :  { %1088 = vrot.lane.b32.xlu1 %v2846_v48, %s2507_s24  ;;  %v969_v49 = vpop.permute.xlu0 %968  ;;  %v945_v50 = vpop.permute.xlu1 %944  ;;  %s2513_s24 = smov [#allocation2]  }
 0x8fc   :  { %v974_v51 = vsel %vm132_vm1, %v969_v49, 0  ;;  %v950_v52 = vsel %vm132_vm1, %v945_v50, 0 }
 0x8fd   :  { %959 = vmatpush.bf16.xpose.msrb.mxu1 %v950_v52  ;;  %983 = vmatpush.bf16.xpose.msrb.mxu2 %v974_v51 }
 0x904   :  { %2135 = vmatmul.msk.bf16.vlgmr.msrb.gmra.mxu1 %vm132_vm1, %v933_v20  ;;  %2136 = vmatmul.msk.bf16.vlgmr.msrb.gmra.mxu2 %vm132_vm1, %v934_v19 }
 0x92c   :  { %v993_v53 = vpop.permute.xlu2 %992 }
 0x92d   :  { %v998_v31 = vsel %vm132_vm1, %v993_v53, 0 }
 0x92e   :  { %1007 = vmatpush.bf16.xpose.msrb.mxu3 %v998_v31 }
 0x935   :  { %2137 = vmatmul.msk.bf16.vlgmr.msrb.gmra.mxu3 %vm132_vm1, %v935_v25 }
 0x94c   :  { %v1065_v54 = vpop.permute.xlu2 %1064 }
 0x94d   :  { %v1070_v55 = vsel %vm132_vm1, %v1065_v54, 0 }
 0x94e   :  { %1079 = vmatpush.bf16.xpose.msra.mxu2 %v1070_v55 }
 0x954   :  { %v1113_v56 = vpop.permute.xlu2 %1112 }
 0x955   :  { %2140 = vmatmul.msk.bf16.vlgmr.msra.gmra.mxu2 %vm132_vm1, %v938_v28  ;;  %v1118_v59 = vsel %vm132_vm1, %v1113_v56, 0 }
 0x964   :  { %v1017_v57 = vpop.permute.xlu0 %1016 }
 0x965   :  { %v1022_v58 = vsel %vm132_vm1, %v1017_v57, 0 }
 0x966   :  { %1031 = vmatpush.bf16.xpose.msra.mxu0 %v1022_v58 }
 0x96c   :  { %v1041_v60 = vpop.permute.xlu0 %1040 }
 0x96d   :  { %v1046_v61 = vsel %vm132_vm1, %v1041_v60, 0  ;;  %v1089_v62 = vpop.permute.xlu1 %1088  ;;  %2138 = vmatmul.msk.bf16.vlgmr.msra.gmra.mxu0 %vm132_vm1, %v936_v29 }
 0x96e   :  { %1127 = vmatpush.bf16.xpose.msrb.mxu0 %v1118_v59  ;;  %v1094_v63 = vsel %vm132_vm1, %v1089_v62, 0  ;;  %1055 = vmatpush.bf16.xpose.msra.mxu1 %v1046_v61 }
 0x96f   :  { %1103 = vmatpush.bf16.xpose.msra.mxu3 %v1094_v63 }
 0x975   :  { %2139 = vmatmul.msk.bf16.vlgmr.msra.gmra.mxu1 %vm132_vm1, %v937_v34 }
 0x976   :  { %2141 = vmatmul.msk.bf16.vlgmr.msra.gmra.mxu3 %vm132_vm1, %v939_v40 }
 0x97d   :  { %2142 = vmatmul.msk.bf16.vlgmr.msrb.gmra.mxu0 %vm132_vm1, %v940_v39 }
 0x981   :  { %v961_v0 = vpop.f32.mrf.mxu1 }
 0x982   :  { %v1133_v1 = vsel %vm132_vm1, %v961_v0, -inf }
 0x983   :  { %1134 = vmax.xlane.f32.xlu2 %v1133_v1 }
 0x987   :  { %v985_v4 = vpop.f32.mrf.mxu2 }
 0x988   :  { %v1136_v5 = vsel %vm132_vm1, %v985_v4, -inf }
 0x989   :  { %1137 = vmax.xlane.f32.xlu1 %v1136_v5  ;;  %v963_v6 = vpop.f32.mrf.mxu1 }
 0x98f   :  { %v987_v7 = vpop.f32.mrf.mxu2 }
 0x99b   :  { %1229 = vrot.lane.b32.xlu2 %v2824_v24, %s2508_s25 }
 0x9b8   :  { %v1009_v8 = vpop.f32.mrf.mxu3 }
 0x9b9   :  { %v1139_v9 = vsel %vm132_vm1, %v1009_v8, -inf }
 0x9ba   :  { %1140 = vmax.xlane.f32.xlu0 %v1139_v9 }
 0x9c0   :  { %v1011_v10 = vpop.f32.mrf.mxu3 }
 0x9ce   :  { %1271 = vrot.lane.b32.xlu0 %v2830_v26, %s2508_s25 }
 0x9d8   :  { %v2877_v13 = vpop.f32.mrf.mxu2 }
 0x9d9   :  { %v1148_v3 = vsel %vm132_vm1, %v2877_v13, -inf }
 0x9e0   :  { %v1083_v14 = vpop.f32.mrf.mxu2 }
 0x9ea   :  { %v1033_v15 = vpop.f32.mrf.mxu0 }
 0x9eb   :  { %v1142_v42 = vsel %vm132_vm1, %v1033_v15, -inf }
 0x9f2   :  { %v1035_v16 = vpop.f32.mrf.mxu0  ;;  %v1057_v17 = vpop.f32.mrf.mxu1 }
 0x9f3   :  { %v1145_v18 = vsel %vm132_vm1, %v1057_v17, -inf }
 0x9f4   :  { %1146 = vmax.xlane.f32.xlu1 %v1145_v18 }
 0x9f6   :  { %v1135_v19 = vpop.xlane.xlu2 %1134 }
 0x9f7   :  { %v1157_v20 = vsub.f32 %v961_v0, %v1135_v19 }
 0x9f9   :  { %v1165_v21 = vmul.f32 1.442695, %v1157_v20  ;;  %v1105_v22 = vpop.f32.mrf.mxu3 }
 0x9fa   :  { %v1059_v24 = vpop.f32.mrf.mxu1  ;;  %v2880_v41 = vpop.f32.mrf.mxu0  ;;  %v1151_v25 = vsel %vm132_vm1, %v1105_v22, -inf }
 0x9fb   :  { %2438 = vpow2.f32 %v1165_v21  ;;  %1152 = vmax.xlane.f32.xlu2 %v1151_v25  ;;  %v1154_v39 = vsel %vm132_vm1, %v2880_v41, -inf }
 0x9fc   :  { %1143 = vmax.xlane.f32.xlu1 %v1142_v42  ;;  %v1138_v26 = vpop.xlane.xlu1 %1137 }
 0x9fd   :  { %v1158_v43 = vsub.f32 %v985_v4, %v1138_v26 }
 0x9fe   :  { %v1230_v27 = vpop.permute.xlu2 %1229 }
 0x9ff   :  { %v1167_v28 = vmul.f32 1.442695, %v1158_v43  ;;  %v1235_v29 = vsel %vm421_vm2, %v1230_v27, 0 }
 0xa00   :  { %1244 = vmatpush.bf16.msrb.mxu1 %v1235_v29 }
 0xa01   :  { %v2439_v30 = vpop.eup %2438  ;;  %2440 = vpow2.f32 %v1167_v28  ;;  %v1107_v32 = vpop.f32.mrf.mxu3 }
 0xa02   :  { %v1131_v33 = vpop.f32.mrf.mxu0  ;;  %v1181_v34 = vsel %vm132_vm1, %v2439_v30, 0.0 }
 0xa03   :  { %1182 = vadd.xlane.f32.xlu0 %v1181_v34 }
 0xa07   :  { %v2441_v37 = vpop.eup %2440 }
 0xa08   :  { %v1184_v38 = vsel %vm132_vm1, %v2441_v37, 0.0 }
 0xa09   :  { %1185 = vadd.xlane.f32.xlu2 %v1184_v38 }
 0xa0b   :  { %1149 = vmax.xlane.f32.xlu0 %v1148_v3 }
 0xa13   :  { %1155 = vmax.xlane.f32.xlu0 %v1154_v39 }
 0xa15   :  { %1250 = vrot.lane.b32.xlu1 %v2822_v23, %s2508_s25 }
 0xa27   :  { %1292 = vrot.lane.b32.xlu0 %v2836_v36, %s2508_s25 }
 0xa2d   :  { %v1141_v40 = vpop.xlane.xlu0 %1140 }
 0xa2e   :  { %v1159_v44 = vsub.f32 %v1009_v8, %v1141_v40 }
 0xa30   :  { %v1169_v45 = vmul.f32 1.442695, %v1159_v44 }
 0xa32   :  { %2442 = vpow2.f32 %v1169_v45 }
 0xa38   :  { %v2895_v49 = vpop.eup %2442 }
 0xa39   :  { %v1187_v50 = vsel %vm132_vm1, %v2895_v49, 0.0 }
 0xa3f   :  { %1188 = vadd.xlane.f32.xlu1 %v1187_v50 }
 0xa40   :  { %v1272_v51 = vpop.permute.xlu0 %1271 }
 0xa41   :  { %v1277_v52 = vsel %vm421_vm2, %v1272_v51, 0 }
 0xa42   :  { %1286 = vmatpush.bf16.msrb.mxu3 %v1277_v52 }
 0xa67   :  { %v1147_v53 = vpop.xlane.xlu1 %1146 }
 0xa68   :  { %v1161_v31 = vsub.f32 %v1057_v17, %v1147_v53 }
 0xa6a   :  { %v1173_v23 = vmul.f32 1.442695, %v1161_v31 }
 0xa6c   :  { %2444 = vpow2.f32 %v1173_v23 }
 0xa6e   :  { %v1153_v54 = vpop.xlane.xlu2 %1152 }
 0xa6f   :  { %v1144_v36 = vpop.xlane.xlu1 %1143  ;;  %v1163_v57 = vsub.f32 %v1105_v22, %v1153_v54 }
 0xa70   :  { %v1160_v55 = vsub.f32 %v1033_v15, %v1144_v36 }
 0xa71   :  { %v1177_v60 = vmul.f32 1.442695, %v1163_v57 }
 0xa72   :  { %v2900_v56 = vpop.eup %2444  ;;  %v1171_v58 = vmul.f32 1.442695, %v1160_v55 }
 0xa73   :  { %v1193_v59 = vsel %vm132_vm1, %v2900_v56, 0.0 }
 0xa74   :  { %2446 = vpow2.f32 %v1171_v58  ;;  %1194 = vadd.xlane.f32.xlu0 %v1193_v59 }
 0xa76   :  { %v1183_v61 = vpop.xlane.xlu0 %1182 }
 0xa77   :  { %2448 = vrcp.f32 %v1183_v61 }
 0xa78   :  { %2450 = vpow2.f32 %v1177_v60 }
 0xa7a   :  { %v2447_v62 = vpop.eup %2446 }
 0xa7b   :  { %v1190_v63 = vsel %vm132_vm1, %v2447_v62, 0.0 }
 0xa7c   :  { %v1186_v0 = vpop.xlane.xlu2 %1185  ;;  %1191 = vadd.xlane.f32.xlu2 %v1190_v63 }
 0xa7d   :  { %v2449_v1 = vpop.eup %2448  ;;  %2452 = vrcp.f32 %v1186_v0 }
 0xa7e   :  { %v1213_v4 = vmul.f32 %v2449_v1, %v2439_v30  ;;  %v1150_v5 = vpop.xlane.xlu0 %1149  ;;  %v2451_v7 = vpop.eup %2450 }
 0xa7f   :  { %v1162_v6 = vsub.f32 %v2877_v13, %v1150_v5  ;;  %v1199_v14 = vsel %vm132_vm1, %v2451_v7, 0.0 }
 0xa80   :  { %v1221_v8 = vpack.c.bf16 %v1213_v4, %v1213_v4 }
 0xa81   :  { %v1175_v9 = vmul.f32 1.442695, %v1162_v6 }
 0xa82   :  { %2143 = vmatmul.msk.bf16.vlgmr.msrb.gmra.mxu1 %vm132_vm1, %v1221_v8 }
 0xa83   :  { %v2453_v10 = vpop.eup %2452  ;;  %2454 = vpow2.f32 %v1175_v9 }
 0xa84   :  { %1200 = vadd.xlane.f32.xlu2 %v1199_v14  ;;  %v1214_v15 = vmul.f32 %v2453_v10, %v2441_v37 }
 0xa86   :  { %v1156_v16 = vpop.xlane.xlu0 %1155  ;;  %v1222_v21 = vpack.c.bf16 %v1214_v15, %v1214_v15 }
 0xa87   :  { %v1164_v17 = vsub.f32 %v2880_v41, %v1156_v16  ;;  %v1251_v18 = vpop.permute.xlu1 %1250 }
 0xa88   :  { %v1256_v19 = vsel %vm421_vm2, %v1251_v18, 0  ;;  %1355 = vrot.lane.b32.xlu0 %v2846_v48, %s2508_s25  ;;  %v2311_v18 = vld [vmem:[%s3111_s3 + $0x18] sm:$0xff] }
 0xa89   :  { %v2455_v13 = vpop.eup %2454  ;;  %v1179_v20 = vmul.f32 1.442695, %v1164_v17  ;;  %1265 = vmatpush.bf16.msrb.mxu2 %v1256_v19  ;;  %v2310_v19 = vld [vmem:[%s3111_s3 + $0x10] sm:$0xff] }
 0xa8a   :  { %v1196_v22 = vsel %vm132_vm1, %v2455_v13, 0.0 }
 0xa8b   :  { %2456 = vpow2.f32 %v1179_v20  ;;  %1197 = vadd.xlane.f32.xlu1 %v1196_v22 }
 0xa8c   :  { %2144 = vmatmul.msk.bf16.vlgmr.msrb.gmra.mxu2 %vm132_vm1, %v1222_v21 }
 0xa90   :  { %1376 = vrot.lane.b32.xlu0 %v2844_v47, %s2508_s25 }
 0xa91   :  { %v2457_v24 = vpop.eup %2456 }
 0xa92   :  { %v1202_v41 = vsel %vm132_vm1, %v2457_v24, 0.0 }
 0xa93   :  { %1203 = vadd.xlane.f32.xlu2 %v1202_v41 }
 0xa99   :  { %v1293_v25 = vpop.permute.xlu0 %1292 }
 0xa9a   :  { %v1298_v48 = vsel %vm421_vm2, %v1293_v25, 0 }
 0xa9b   :  { %1307 = vmatpush.bf16.msra.mxu0 %v1298_v48 }
 0xaa4   :  { %1334 = vrot.lane.b32.xlu1 %v2834_v2, %s2508_s25 }
 0xaab   :  { %1313 = vrot.lane.b32.xlu2 %v2842_v46, %s2508_s25  ;;  %s2050_s25 = sshll.u32 %s2513_s24, 4  ;;  %s2051_s25 = int_to_ptr.vmem [resolvable:$true] %s2050_s25 }
 0xab2   :  { %v1189_v42 = vpop.xlane.xlu1 %1188 }
 0xab3   :  { %2458 = vrcp.f32 %v1189_v42 }
 0xab9   :  { %v2459_v26 = vpop.eup %2458 }
 0xaba   :  { %v1215_v43 = vmul.f32 %v2459_v26, %v2895_v49 }
 0xabc   :  { %v1223_v47 = vpack.c.bf16 %v1215_v43, %v1215_v43 }
 0xabe   :  { %2145 = vmatmul.msk.bf16.vlgmr.msrb.gmra.mxu3 %vm132_vm1, %v1223_v47 }
 0xae7   :  { %v1195_v28 = vpop.xlane.xlu0 %1194 }
 0xaef   :  { %v1192_v27 = vpop.xlane.xlu2 %1191 }
 0xaf0   :  { %2460 = vrcp.f32 %v1192_v27 }
 0xaf6   :  { %v2461_v29 = vpop.eup %2460 }
 0xaf7   :  { %v1216_v30 = vmul.f32 %v2461_v29, %v2447_v62  ;;  %v1201_v32 = vpop.xlane.xlu2 %1200 }
 0xaf8   :  { %2462 = vrcp.f32 %v1201_v32  ;;  %v2387_v32 = vld [vmem:[%s3112_s4 + $0x1] ss:$0 sm:$0xff] }
 0xaf9   :  { %v1224_v33 = vpack.c.bf16 %v1216_v30, %v1216_v30  ;;  %2464 = vrcp.f32 %v1195_v28 }
 0xafa   :  { %v1356_v2 = vpop.permute.xlu0 %1355 }
 0xafb   :  { %v1361_v34 = vsel %vm421_vm2, %v1356_v2, 0  ;;  %2146 = vmatmul.msk.bf16.vlgmr.msra.gmra.mxu0 %vm132_vm1, %v1224_v33 }
 0xafc   :  { %1370 = vmatpush.bf16.msra.mxu3 %v1361_v34 }
 0xafe   :  { %v2463_v46 = vpop.eup %2462  ;;  %v1198_v49 = vpop.xlane.xlu1 %1197 }
 0xaff   :  { %v1219_v37 = vmul.f32 %v2463_v46, %v2451_v7  ;;  %v2926_v38 = vpop.f32.mrf.mxu1  ;;  %v2465_v50 = vpop.eup %2464 }
 0xb00   :  { %v1217_v52 = vmul.f32 %v2465_v50, %v2900_v56 }
 0xb01   :  { %v1227_v3 = vpack.c.bf16 %v1219_v37, %v1219_v37 }
 0xb02   :  { %v1377_v39 = vpop.permute.xlu0 %1376  ;;  %v1225_v55 = vpack.c.bf16 %v1217_v52, %v1217_v52 }
 0xb03   :  { %v1382_v40 = vsel %vm421_vm2, %v1377_v39, 0  ;;  %2149 = vmatmul.msk.bf16.vlgmr.msra.gmra.mxu3 %vm132_vm1, %v1227_v3 }
 0xb04   :  { %1391 = vmatpush.bf16.msrb.mxu0 %v1382_v40 }
 0xb06   :  { %v1204_v44 = vpop.xlane.xlu2 %1203 }
 0xb07   :  { %2466 = vrcp.f32 %v1204_v44  ;;  %v1248_v45 = vpop.f32.mrf.mxu1 }
 0xb08   :  { %2468 = vrcp.f32 %v1198_v49 }
 0xb0d   :  { %v2467_v51 = vpop.eup %2466 }
 0xb0e   :  { %v1220_v53 = vmul.f32 %v2467_v51, %v2457_v24  ;;  %v1314_v31 = vpop.permute.xlu2 %1313  ;;  %v2469_v57 = vpop.eup %2468 }
 0xb0f   :  { %v1319_v23 = vsel %vm421_vm2, %v1314_v31, 0  ;;  %v1267_v54 = vpop.f32.mrf.mxu2  ;;  %v1218_v58 = vmul.f32 %v2469_v57, %v2455_v13 }
 0xb10   :  { %v1228_v36 = vpack.c.bf16 %v1220_v53, %v1220_v53  ;;  %1328 = vmatpush.bf16.msra.mxu1 %v1319_v23 }
 0xb11   :  { %v1226_v56 = vpack.c.bf16 %v1218_v58, %v1218_v58 }
 0xb12   :  { %2150 = vmatmul.msk.bf16.vlgmr.msrb.gmra.mxu0 %vm132_vm1, %v1228_v36 }
 0xb13   :  { %2147 = vmatmul.msk.bf16.vlgmr.msra.gmra.mxu1 %vm132_vm1, %v1225_v55  ;;  %v2312_v55 = vld [vmem:[%s3117_s9 + $0x10] sm:$0xff] }
 0xb14   :  { %1459 = vmatpush.bf16.msrb.mxu1 %v2311_v18 }
 0xb16   :  { %v1335_v59 = vpop.permute.xlu1 %1334 }
 0xb17   :  { %v1340_v60 = vsel %vm421_vm2, %v1335_v59, 0  ;;  %v1269_v61 = vpop.f32.mrf.mxu2 }
 0xb18   :  { %1349 = vmatpush.bf16.msra.mxu2 %v1340_v60  ;;  %1460 = vmatpush.bf16.msrb.mxu1 %v2310_v19 }
 0xb1b   :  { %2148 = vmatmul.msk.bf16.vlgmr.msra.gmra.mxu2 %vm132_vm1, %v1226_v56 }
 0xb41   :  { %v1288_v62 = vpop.f32.mrf.mxu3 }
 0xb49   :  { %v1290_v63 = vpop.f32.mrf.mxu3 }
 0xb78   :  { %v1309_v0 = vpop.f32.mrf.mxu0 }
 0xb79   :  { %v2363_v1 = vpack.i.bf16 %v1309_v0, %v1288_v62 }
 0xb7b   :  { %2364 = vrot.lane.b32.xlu1 %v2363_v1, %s3135_s2 }
 0xb80   :  { %v1311_v4 = vpop.f32.mrf.mxu0 }
 0xb86   :  { %v1372_v5 = vpop.f32.mrf.mxu3 }
 0xb8e   :  { %v1374_v6 = vpop.f32.mrf.mxu3 }
 0xb8f   :  { %v1393_v7 = vpop.f32.mrf.mxu0 }
 0xb90   :  { %v2373_v8 = vpack.i.bf16 %v1393_v7, %v1372_v5  ;;  %v1330_v9 = vpop.f32.mrf.mxu1 }
 0xb92   :  { %2374 = vrot.lane.b32.xlu0 %v2373_v8, %s3136_s21 }
 0xb97   :  { %v1395_v10 = vpop.f32.mrf.mxu0 }
 0xb98   :  { %v1332_v14 = vpop.f32.mrf.mxu1 }
 0xb9e   :  { %v1351_v15 = vpop.f32.mrf.mxu2 }
 0xb9f   :  { %v2368_v16 = vpack.i.bf16 %v1351_v15, %v1330_v9  ;;  %v2388_v9 = vld [vmem:[%s3113_s5 + $0x1] ss:$0 sm:$0xff] }
 0xba1   :  { %2369 = vrot.lane.b32.xlu2 %v2368_v16, %s3137_s22  ;;  %v2389_v16 = vld [vmem:[%s3114_s6 + $0x1] ss:$0 sm:$0xff] }
 0xba6   :  { %v1353_v17 = vpop.f32.mrf.mxu2 }
 0xbed   :  { %v2365_v13 = vpop.permute.xlu1 %2364 }
 0xbee   :  { %v2367_v21 = vunpack.i.h.bf16 %v2365_v13  ;;  %v2366_v22 = vunpack.i.l.bf16 %v2365_v13 }
 0xbf0   :  { %v1422_v48 = vsel %vm132_vm1, %v1267_v54, %v2367_v21  ;;  %v1421_v42 = vsel %vm132_vm1, %v2926_v38, %v2366_v22  ;;  %v2317_v22 = vld [vmem:[%s3119_s11 + $0x38] sm:$0xff] }
 0xbf1   :  { %1615 = vmatpush.bf16.msrb.mxu3 %v2317_v22  ;;  %v2393_v22 = vld [vmem:[%s3116_s8 + $0x1] ss:$0 sm:$0xff] }
 0xbfb   :  { %v2370_v20 = vpop.permute.xlu2 %2369 }
 0xbfc   :  { %v2372_v24 = vunpack.i.h.bf16 %v2370_v20  ;;  %v2371_v41 = vunpack.i.l.bf16 %v2370_v20 }
 0xbfe   :  { %v1423_v47 = vsel %vm611_vm3, %v1421_v42, %v2371_v41  ;;  %v1424_v27 = vsel %vm611_vm3, %v1422_v48, %v2372_v24  ;;  %v2316_v24 = vld [vmem:[%s3119_s11 + $0x30] sm:$0xff]  ;;  %v2315_v41 = vld [vmem:[%s3119_s11 + $0x28] sm:$0xff]  ;;  %v2390_v42 = vld [vmem:[%s3118_s10 + $0x1] ss:$0 sm:$0xff]  ;;  %s2052_s10 = sshll.u32 %s3125_s17, 4  ;;  %s2053_s10 = int_to_ptr.hbm [resolvable:$true] %s2052_s10 }
 0xbff   :  { %1616 = vmatpush.bf16.msrb.mxu3 %v2316_v24 }
 0xc03   :  { %1617 = vmatpush.bf16.msrb.mxu3 %v2315_v41 }
 0xc04   :  { %v2375_v25 = vpop.permute.xlu0 %2374 }
 0xc05   :  { %v2377_v26 = vunpack.i.h.bf16 %v2375_v25  ;;  %v2376_v43 = vunpack.i.l.bf16 %v2375_v25  ;;  %v2314_v25 = vld [vmem:[%s3119_s11 + $0x20] sm:$0xff] }
 0xc07   :  { %v1425_v28 = vsel %vm614_vm4, %v1423_v47, %v2376_v43  ;;  %v1426_v29 = vsel %vm614_vm4, %v1424_v27, %v2377_v26  ;;  %1618 = vmatpush.bf16.msrb.mxu3 %v2314_v25 }
 0xc08   :  { %v1427_v30 = vpack.c.bf16 %v1426_v29, %v1425_v28 }
 0xc0a   :  { %2164 = vmatmul.msk.bf16.vlgmr.msrb.gmra.mxu1 %vm81_vm0, %v1427_v30  ;;  %v2391_v30 = vld [vmem:[%s3120_s12 + $0x1] ss:$0 sm:$0xff] }
 0xc87   :  { %v1462_v33 = vpop.f32.mrf.mxu1 }
 0xc88   :  { %v1463_v2 = vadd.f32 %v2387_v32, %v1462_v33 }
 0xc8a   :  { %v1467_v34 = vadd.f32 %v1463_v2, %v2806_v11 }
 0xc8c   :  { %v1473_v46 = vsel %vm81_vm0, %v1467_v34, 0.0 }
 0xc8d   :  { %1474 = vadd.xlane.f32.xlu1 %v1473_v46 }
 0xc8f   :  { %v1464_v37 = vpop.f32.mrf.mxu1 }
 0xc90   :  { %v1465_v38 = vadd.f32 %v2387_v32, %v1464_v37 }
 0xc92   :  { %v1468_v3 = vadd.f32 %v1465_v38, %v2808_v12  ;;  %v2313_v12 = vld [vmem:[%s3117_s9 + $0x18] sm:$0xff] }
 0xc93   :  { %1559 = vmatpush.bf16.msrb.mxu2 %v2313_v12 }
 0xc94   :  { %v1476_v39 = vsel %vm81_vm0, %v1468_v3, 0.0 }
 0xc95   :  { %1477 = vadd.xlane.f32.xlu2 %v1476_v39 }
 0xc97   :  { %1560 = vmatpush.bf16.msrb.mxu2 %v2312_v55  ;;  %v2323_v55 = vld [vmem:[%s3121_s13 + $0x28] sm:$0xff] }
 0xc9b   :  { %1791 = vmatpush.bf16.msra.mxu2 %v2323_v55 }
 0xd00   :  { %v1475_v40 = vpop.xlane.xlu1 %1474 }
 0xd01   :  { %v1479_v44 = vmul.f32 %v1475_v40, %v2746_v35 }
 0xd03   :  { %v1481_v45 = vsub.f32 %v1467_v34, %v1479_v44 }
 0xd05   :  { %v1483_v49 = vmul.f32 %v1481_v45, %v1481_v45 }
 0xd07   :  { %v1485_v50 = vsel %vm81_vm0, %v1483_v49, 0.0 }
 0xd08   :  { %v1478_v51 = vpop.xlane.xlu2 %1477  ;;  %1486 = vadd.xlane.f32.xlu0 %v1485_v50 }
 0xd09   :  { %v1480_v11 = vmul.f32 %v1478_v51, %v2746_v35 }
 0xd0b   :  { %v1482_v52 = vsub.f32 %v1468_v3, %v1480_v11 }
 0xd0d   :  { %v1484_v53 = vmul.f32 %v1482_v52, %v1482_v52 }
 0xd0f   :  { %v1488_v31 = vsel %vm81_vm0, %v1484_v53, 0.0 }
 0xd10   :  { %1489 = vadd.xlane.f32.xlu1 %v1488_v31 }
 0xd7b   :  { %v1487_v23 = vpop.xlane.xlu0 %1486 }
 0xd7c   :  { %v1491_v54 = vmul.f32 %v1487_v23, %v2746_v35 }
 0xd7e   :  { %v1493_v36 = vadd.f32 1e-05, %v1491_v54  ;;  %v2321_v54 = vld [vmem:[%s3121_s13 + $0x18] sm:$0xff] }
 0xd7f   :  { %1724 = vmatpush.bf16.msra.mxu0 %v2321_v54 }
 0xd80   :  { %2470 = vrsqrt.f32 %v1493_v36  ;;  %vm1501_vm2 = vweird.f32 %v1493_v36 }
 0xd83   :  { %v1490_v57 = vpop.xlane.xlu1 %1489 }
 0xd84   :  { %v1492_v58 = vmul.f32 %v1490_v57, %v2746_v35  ;;  %v2325_v57 = vld [vmem:[%s3121_s13 + $0x38] sm:$0xff] }
 0xd85   :  { %1828 = vmatpush.bf16.msra.mxu3 %v2325_v57 }
 0xd86   :  { %v2471_v59 = vpop.eup %2470  ;;  %v1494_v60 = vadd.f32 1e-05, %v1492_v58  ;;  %v2320_v58 = vld [vmem:[%s3121_s13 + $0x10] sm:$0xff] }
 0xd87   :  { %v1496_v61 = vmul.f32 %v2471_v59, %v1493_v36  ;;  %vm1502_vm1 = vweird.f32 %v2471_v59  ;;  %v2319_v36 = vld [vmem:[%s3121_s13 + $0x8] sm:$0xff]  ;;  %1725 = vmatpush.bf16.msra.mxu0 %v2320_v58 }
 0xd88   :  { %2472 = vrsqrt.f32 %v1494_v60  ;;  %vm1503_vm3 = vmor %vm1501_vm2, %vm1502_vm1  ;;  %vm1511_vm8 = vweird.f32 %v1494_v60  ;;  %1755 = vmatpush.bf16.msra.mxu1 %v2319_v36 }
 0xd89   :  { %v1497_v56 = vmul.f32 %v2471_v59, %v1496_v61  ;;  %v2322_v61 = vld [vmem:[%s3121_s13 + $0x20] sm:$0xff] }
 0xd8a   :  { %1792 = vmatpush.bf16.msra.mxu2 %v2322_v61 }
 0xd8b   :  { %v1498_v62 = vmul.f32 0.5, %v1497_v56 }
 0xd8d   :  { %v1499_v63 = vsub.f32 1.5, %v1498_v62  ;;  %v2324_v62 = vld [vmem:[%s3121_s13 + $0x30] sm:$0xff] }
 0xd8e   :  { %v2473_v0 = vpop.eup %2472  ;;  %1829 = vmatpush.bf16.msra.mxu3 %v2324_v62 }
 0xd8f   :  { %v1500_v1 = vmul.f32 %v2471_v59, %v1499_v63  ;;  %v1506_v4 = vmul.f32 %v2473_v0, %v1494_v60  ;;  %vm1512_vm4 = vweird.f32 %v2473_v0  ;;  %v2318_v60 = vld [vmem:[%s3121_s13] sm:$0xff] }
 0xd90   :  { %vm1513_vm9 = vmor %vm1511_vm8, %vm1512_vm4  ;;  %1756 = vmatpush.bf16.msra.mxu1 %v2318_v60 }
 0xd91   :  { %v1507_v5 = vmul.f32 %v2473_v0, %v1506_v4  ;;  %v1504_v6 = vsel %vm1503_vm3, %v2471_v59, %v1500_v1 }
 0xd92   :  { %v1515_v10 = vmul.f32 %v1504_v6, %v1481_v45  ;;  %v2331_v6 = vld [vmem:[%s3121_s13 + $0x68] sm:$0xff] }
 0xd93   :  { %v1508_v7 = vmul.f32 0.5, %v1507_v5  ;;  %v2327_v5 = vld [vmem:[%s3121_s13 + $0x48] sm:$0xff] }
 0xd94   :  { %v1520_v17 = vmul.f32 %v2388_v9, %v1515_v10  ;;  %1865 = vmatpush.bf16.msrb.mxu0 %v2327_v5  ;;  %v2328_v10 = vld [vmem:[%s3121_s13 + $0x50] sm:$0xff] }
 0xd95   :  { %v1509_v8 = vsub.f32 1.5, %v1508_v7 }
 0xd96   :  { %v1525_v13 = vadd.f32 %v2389_v16, %v1520_v17 }
 0xd97   :  { %v1510_v14 = vmul.f32 %v2473_v0, %v1509_v8  ;;  %v2333_v8 = vld [vmem:[%s3121_s13 + $0x78] sm:$0xff] }
 0xd99   :  { %v1514_v15 = vsel %vm1513_vm9, %v2473_v0, %v1510_v14 }
 0xd9a   :  { %v1516_v18 = vmul.f32 %v1514_v15, %v1482_v52  ;;  %v2330_v15 = vld [vmem:[%s3121_s13 + $0x60] sm:$0xff] }
 0xd9c   :  { %v1521_v19 = vmul.f32 %v2388_v9, %v1516_v18  ;;  %v2326_v9 = vld [vmem:[%s3121_s13 + $0x40] sm:$0xff] }
 0xd9d   :  { %1866 = vmatpush.bf16.msrb.mxu0 %v2326_v9 }
 0xd9e   :  { %v1526_v20 = vadd.f32 %v2389_v16, %v1521_v19  ;;  %v2332_v16 = vld [vmem:[%s3121_s13 + $0x70] sm:$0xff] }
 0xda0   :  { %v1527_v21 = vpack.c.bf16 %v1526_v20, %v1525_v13 }
 0xda2   :  { %2180 = vmatmul.msk.bf16.vlgmr.msrb.gmra.mxu2 %vm81_vm0, %v1527_v21 }
 0xda3   :  { %1939 = vmatpush.bf16.msrb.mxu2 %v2331_v6 }
 0xda7   :  { %1940 = vmatpush.bf16.msrb.mxu2 %v2330_v15 }
 0xe25   :  { %v1562_v48 = vpop.f32.mrf.mxu2 }
 0xe26   :  { %v1563_v26 = vadd.f32 %v2390_v42, %v1562_v48 }
 0xe28   :  { %v1567_v27 = vmax.f32 %v1563_v26, 0.0 }
 0xe2d   :  { %v1564_v43 = vpop.f32.mrf.mxu2 }
 0xe2e   :  { %v1565_v47 = vadd.f32 %v2390_v42, %v1564_v43 }
 0xe30   :  { %v1568_v28 = vmax.f32 %v1565_v47, 0.0 }
 0xe32   :  { %v1569_v29 = vpack.c.bf16 %v1568_v28, %v1567_v27 }
 0xe34   :  { %2206 = vmatmul.msk.bf16.vlgmr.msrb.gmra.mxu3 %vm797_vm12, %v1569_v29 }
 0xe35   :  { %1976 = vmatpush.bf16.msrb.mxu3 %v2333_v8 }
 0xe39   :  { %1977 = vmatpush.bf16.msrb.mxu3 %v2332_v16 }
 0xeb7   :  { %v1620_v32 = vpop.f32.mrf.mxu3 }
 0xeb8   :  { %v1621_v33 = vadd.f32 %v2391_v30, %v1620_v32 }
 0xeba   :  { %v1625_v2 = vadd.f32 %v1621_v33, %v1525_v13  ;;  %v2392_v13 = vld [vmem:[%s3115_s7 + $0x1] ss:$0 sm:$0xff] }
 0xebc   :  { %v1631_v34 = vsel %vm81_vm0, %v1625_v2, 0.0 }
 0xebd   :  { %1632 = vadd.xlane.f32.xlu2 %v1631_v34 }
 0xebf   :  { %v1622_v46 = vpop.f32.mrf.mxu3 }
 0xec0   :  { %v1623_v37 = vadd.f32 %v2391_v30, %v1622_v46 }
 0xec2   :  { %v1626_v38 = vadd.f32 %v1623_v37, %v1526_v20 }
 0xec4   :  { %v1634_v3 = vsel %vm81_vm0, %v1626_v38, 0.0 }
 0xec5   :  { %1635 = vadd.xlane.f32.xlu0 %v1634_v3 }
 0xf30   :  { %v1633_v39 = vpop.xlane.xlu2 %1632 }
 0xf31   :  { %v1637_v40 = vmul.f32 %v1633_v39, %v2746_v35 }
 0xf33   :  { %v3001_v44 = vsub.f32 %v1625_v2, %v1637_v40 }
 0xf35   :  { %v1641_v45 = vmul.f32 %v3001_v44, %v3001_v44 }
 0xf37   :  { %v1643_v49 = vsel %vm81_vm0, %v1641_v45, 0.0 }
 0xf38   :  { %v1636_v50 = vpop.xlane.xlu0 %1635  ;;  %1644 = vadd.xlane.f32.xlu1 %v1643_v49 }
 0xf39   :  { %v1638_v51 = vmul.f32 %v1636_v50, %v2746_v35 }
 0xf3b   :  { %v3007_v11 = vsub.f32 %v1626_v38, %v1638_v51 }
 0xf3d   :  { %v1642_v52 = vmul.f32 %v3007_v11, %v3007_v11 }
 0xf3f   :  { %v1646_v53 = vsel %vm81_vm0, %v1642_v52, 0.0 }
 0xf40   :  { %1647 = vadd.xlane.f32.xlu2 %v1646_v53 }
 0xfab   :  { %v1645_v31 = vpop.xlane.xlu1 %1644 }
 0xfac   :  { %v1649_v12 = vmul.f32 %v1645_v31, %v2746_v35 }
 0xfae   :  { %v1651_v23 = vadd.f32 1e-05, %v1649_v12 }
 0xfb0   :  { %2474 = vrsqrt.f32 %v1651_v23  ;;  %vm1659_vm11 = vweird.f32 %v1651_v23 }
 0xfb3   :  { %v1648_v59 = vpop.xlane.xlu2 %1647 }
 0xfb4   :  { %v1650_v56 = vmul.f32 %v1648_v59, %v2746_v35  ;;  %v2329_v35 = vld [vmem:[%s3121_s13 + $0x58] sm:$0xff] }
 0xfb5   :  { %1902 = vmatpush.bf16.msrb.mxu1 %v2329_v35  ;;  %v2334_v35 = vld [vmem:[%s3123_s15] sm:$0xff] }
 0xfb6   :  { %v2475_v63 = vpop.eup %2474  ;;  %v1652_v0 = vadd.f32 1e-05, %v1650_v56 }
 0xfb7   :  { %v1654_v1 = vmul.f32 %v2475_v63, %v1651_v23  ;;  %vm1660_vm10 = vweird.f32 %v2475_v63 }
 0xfb8   :  { %2476 = vrsqrt.f32 %v1652_v0  ;;  %vm1661_vm13 = vmor %vm1659_vm11, %vm1660_vm10  ;;  %vm1669_vm15 = vweird.f32 %v1652_v0 }
 0xfb9   :  { %v1655_v4 = vmul.f32 %v2475_v63, %v1654_v1  ;;  %1903 = vmatpush.bf16.msrb.mxu1 %v2328_v10  ;;  %v2336_v1 = vld [vmem:[%s3123_s15 + $0x10] sm:$0xff] }
 0xfbb   :  { %v1656_v7 = vmul.f32 0.5, %v1655_v4  ;;  %v2335_v4 = vld [vmem:[%s3123_s15 + $0x8] sm:$0xff] }
 0xfbd   :  { %v1657_v14 = vsub.f32 1.5, %v1656_v7 }
 0xfbe   :  { %v2477_v17 = vpop.eup %2476 }
 0xfbf   :  { %v1658_v18 = vmul.f32 %v2475_v63, %v1657_v14  ;;  %v1664_v19 = vmul.f32 %v2477_v17, %v1652_v0  ;;  %vm1670_vm14 = vweird.f32 %v2477_v17  ;;  %v2337_v0 = vld [vmem:[%s3123_s15 + $0x18] sm:$0xff] }
 0xfc0   :  { %vm1671_vm5 = vmor %vm1669_vm15, %vm1670_vm14 }
 0xfc1   :  { %v1662_v20 = vsel %vm1661_vm13, %v2475_v63, %v1658_v18  ;;  %v1665_v21 = vmul.f32 %v2477_v17, %v1664_v19 }
 0xfc2   :  { %v1673_v24 = vmul.f32 %v1662_v20, %v3001_v44 }
 0xfc3   :  { %v1666_v41 = vmul.f32 0.5, %v1665_v21 }
 0xfc4   :  { %v1678_v25 = vmul.f32 %v2392_v13, %v1673_v24 }
 0xfc5   :  { %v1667_v48 = vsub.f32 1.5, %v1666_v41 }
 0xfc6   :  { %v1683_v42 = vadd.f32 %v2393_v22, %v1678_v25 }
 0xfc7   :  { %v1668_v26 = vmul.f32 %v2477_v17, %v1667_v48  ;;  %v2394_v48 = vld [vmem:[%s3122_s14] ss:$0 sm:$0xff] }
 0xfc8   :  { %v1685_v47 = vpack.c.bf16 %v1683_v42, %v1683_v42 }
 0xfc9   :  { %v1672_v43 = vsel %vm1671_vm5, %v2477_v17, %v1668_v26 }
 0xfca   :  { %v1674_v27 = vmul.f32 %v1672_v43, %v3007_v11  ;;  %v1697_v29 = vunpack.c.l.b16 %v1685_v47 }
 0xfcc   :  { %v1679_v28 = vmul.f32 %v2392_v13, %v1674_v27  ;;  %v1699_v2 = vrot.slane %v1697_v29, 1  ;;  %v1766_v34 = vrot.slane %v1697_v29, 2  ;;  %v1803_v46 = vrot.slane %v1697_v29, 3 }
 0xfcd   :  { %v1840_v53 = vrot.slane %v1697_v29, 4  ;;  %v1877_v36 = vrot.slane %v1697_v29, 5  ;;  %v1914_v55 = vrot.slane %v1697_v29, 6  ;;  %v1951_v57 = vrot.slane %v1697_v29, 7 }
 0xfce   :  { %v1684_v30 = vadd.f32 %v2393_v22, %v1679_v28 }
 0xfd0   :  { %v1686_v32 = vpack.c.bf16 %v1684_v30, %v1684_v30  ;;  %v2395_v30 = vld [vmem:[%s3124_s16] ss:$0 sm:$0xff] }
 0xfd2   :  { %v1698_v33 = vunpack.c.l.b16 %v1686_v32 }
 0xfd4   :  { %v1701_v37 = vsel %vm1700_vm6, %v1698_v33, %v1699_v2  ;;  %v1731_v38 = vrot.slane %v1698_v33, 7  ;;  %v1767_v3 = vrot.slane %v1698_v33, 1  ;;  %v1804_v39 = vrot.slane %v1698_v33, 2 }
 0xfd5   :  { %v1702_v40 = vpack.c.b16 %v1701_v37, %v1701_v37  ;;  %v1841_v52 = vrot.slane %v1698_v33, 3  ;;  %v1878_v31 = vrot.slane %v1698_v33, 4  ;;  %v1915_v12 = vrot.slane %v1698_v33, 5 }
 0xfd6   :  { %v1732_v44 = vsel %vm1700_vm6, %v1731_v38, %v1697_v29  ;;  %v1768_v45 = vsel %vm1700_vm6, %v1767_v3, %v1766_v34  ;;  %v1805_v49 = vsel %vm1700_vm6, %v1804_v39, %v1803_v46  ;;  %v1952_v23 = vrot.slane %v1698_v33, 6 }
 0xfd7   :  { %2217 = vmatmul.msk.bf16.vlgmr.msra.gmra.mxu0 %vm81_vm0, %v1702_v40  ;;  %v1733_v50 = vpack.c.b16 %v1732_v44, %v1732_v44  ;;  %v1769_v51 = vpack.c.b16 %v1768_v45, %v1768_v45  ;;  %v1806_v11 = vpack.c.b16 %v1805_v49, %v1805_v49  ;;  %v1842_v54 = vsel %vm1700_vm6, %v1841_v52, %v1840_v53 }
 0xfd8   :  { %v1879_v58 = vsel %vm1700_vm6, %v1878_v31, %v1877_v36  ;;  %v1916_v59 = vsel %vm1700_vm6, %v1915_v12, %v1914_v55  ;;  %v1843_v60 = vpack.c.b16 %v1842_v54, %v1842_v54  ;;  %v1953_v61 = vsel %vm1700_vm6, %v1952_v23, %v1951_v57  ;;  %2034 = vmatpush.bf16.msra.mxu0 %v2337_v0 }
 0xfd9   :  { %2226 = vmatmul.msk.bf16.vlgmr.msra.gmra.mxu1 %vm81_vm0, %v1733_v50  ;;  %2235 = vmatmul.msk.bf16.vlgmr.msra.gmra.mxu2 %vm81_vm0, %v1769_v51  ;;  %v1880_v56 = vpack.c.b16 %v1879_v58, %v1879_v58  ;;  %v1917_v62 = vpack.c.b16 %v1916_v59, %v1916_v59  ;;  %v1954_v63 = vpack.c.b16 %v1953_v61, %v1953_v61 }
 0xfda   :  { %2244 = vmatmul.msk.bf16.vlgmr.msra.gmra.mxu3 %vm81_vm0, %v1806_v11 }
 0xfdc   :  { %2035 = vmatpush.bf16.msra.mxu0 %v2336_v1 }
 0xfe0   :  { %2036 = vmatpush.bf16.msra.mxu0 %v2335_v4 }
 0xfe4   :  { %2037 = vmatpush.bf16.msra.mxu0 %v2334_v35 }
 0xfe7   :  { %2253 = vmatmul.msk.bf16.vlgmr.msrb.gmra.mxu0 %vm81_vm0, %v1843_v60 }
 0xfe9   :  { %2262 = vmatmul.msk.bf16.vlgmr.msrb.gmra.mxu1 %vm81_vm0, %v1880_v56  ;;  %2271 = vmatmul.msk.bf16.vlgmr.msrb.gmra.mxu2 %vm81_vm0, %v1917_v62 }
 0xfea   :  { %2280 = vmatmul.msk.bf16.vlgmr.msrb.gmra.mxu3 %vm81_vm0, %v1954_v63  ;;  %vm2043_vm0 = vcmask 123904  }
0x1054   :  { %v1727_v5 = vpop.f32.mrf.mxu0 }
0x1056   :  { %v1758_v6 = vpop.f32.mrf.mxu1 }
0x1057   :  { %v1759_v14 = vadd.f32 %v1758_v6, %v1727_v5 }
0x105c   :  { %v1729_v7 = vpop.f32.mrf.mxu0  ;;  %v1794_v8 = vpop.f32.mrf.mxu2 }
0x105d   :  { %v1831_v9 = vpop.f32.mrf.mxu3  ;;  %v1798_v15 = vadd.f32 %v1794_v8, %v1759_v14 }
0x105e   :  { %v1760_v10 = vpop.f32.mrf.mxu1 }
0x105f   :  { %v1835_v18 = vadd.f32 %v1831_v9, %v1798_v15 }
0x1064   :  { %v1796_v16 = vpop.f32.mrf.mxu2  ;;  %v1868_v17 = vpop.f32.mrf.mxu0 }
0x1065   :  { %v1833_v19 = vpop.f32.mrf.mxu3  ;;  %v1872_v20 = vadd.f32 %v1868_v17, %v1835_v18 }
0x1066   :  { %v1905_v13 = vpop.f32.mrf.mxu1 }
0x1067   :  { %v1909_v21 = vadd.f32 %v1905_v13, %v1872_v20 }
0x106c   :  { %v1870_v22 = vpop.f32.mrf.mxu0  ;;  %v1942_v24 = vpop.f32.mrf.mxu2 }
0x106d   :  { %v1946_v41 = vadd.f32 %v1942_v24, %v1909_v21  ;;  %v1979_v25 = vpop.f32.mrf.mxu3 }
0x106e   :  { %v1907_v42 = vpop.f32.mrf.mxu1 }
0x106f   :  { %v1983_v26 = vadd.f32 %v1979_v25, %v1946_v41 }
0x1071   :  { %v1988_v43 = vadd.f32 %v2394_v48, %v1983_v26 }
0x1073   :  { %v1989_v47 = vmax.f32 %v1988_v43, 0.0 }
0x1074   :  { %v1944_v27 = vpop.f32.mrf.mxu2 }
0x1075   :  { %v1990_v28 = vpack.c.bf16 %v1989_v47, %v1989_v47  ;;  %v1981_v29 = vpop.f32.mrf.mxu3 }
0x1077   :  { %2297 = vmatmul.msk.bf16.vlgmr.msra.gmra.mxu0 %vm797_vm12, %v1990_v28 }
0x10f4   :  { %v2039_v32 = vpop.f32.mrf.mxu0 }
0x10f5   :  { %v2040_v33 = vadd.f32 %v2395_v30, %v2039_v32 }
0x10f7   :  { %2044 = vst.msk [vmem:[#allocation2] sm:$0x3] %vm2043_vm0, %v2040_v33 }
0x10f8   :  { %2055 = dma.vmem_to_hbm [thread:$0]  %s2051_s25, 32, %s2053_s10, [#allocation3]  }
0x10fc   :  { %v2041_v2 = vpop.f32.mrf.mxu0 }
0x10fd   :  { %2502 = dma.done.wait [#allocation3], 32  }
0x10fe   :  { %2503 = vsyncadd [#allocation3], 4294967264 }
0x10ff   :  { %2060 = vsyncpa [#allocation3], 1 }

</bundles_post_ra>
